<compile_context>
chip_gen: v7x
topology: tpu7x:2x2x1
jax: 0.10.0
libtpu: 0.0.40
codegen_flags: <defaults>
</compile_context>

<pallas_src>
import functools

import jax
import jax.numpy as jnp
from jax import lax
from jax.experimental import pallas as pl
from jax.experimental.pallas import tpu as pltpu


# ---------------------------------------------------------------------------
# helpers
# ---------------------------------------------------------------------------

def _pick_tile(dim, target, align):
    """Largest `align`-multiple divisor of `dim` that is <= target, else `dim`.

    Guarantees the tile either equals the full dim or satisfies the (8,128)
    alignment rule, and always divides `dim` exactly (no ragged K reduction).
    """
    if dim <= target:
        return dim
    c = (target // align) * align
    while c >= align:
        if dim % c == 0:
            return c
        c -= align
    return dim


def _vmem_limit(estimate_bytes):
    """Explicit scoped-VMEM request: estimate + headroom, clamped for v7x (64 MiB)."""
    return int(min(max(int(estimate_bytes) + (8 << 20), 24 << 20), 48 << 20))


# ---------------------------------------------------------------------------
# Tiled linear kernel:  y = (relu(x)?) @ W_t + b   (W_t already (K, N))
# ---------------------------------------------------------------------------

def _linear_kernel(x_ref, w_ref, b_ref, o_ref, acc_ref, *, apply_relu):
    @pl.when(pl.program_id(2) == 0)
    def _():
        acc_ref[...] = jnp.zeros_like(acc_ref)

    x = x_ref[...]
    if apply_relu:                      # ReLU is elementwise -> safe per K-tile
        x = jnp.maximum(x, 0.0)
    acc_ref[...] += jnp.dot(x, w_ref[...], preferred_element_type=jnp.float32)

    @pl.when(pl.program_id(2) == pl.num_programs(2) - 1)
    def _():
        o_ref[...] = (acc_ref[...] + b_ref[...]).astype(o_ref.dtype)


def _linear(x, w_t, bias, *, apply_relu=False,
            tm_target=256, tn_target=256, tk_target=512):
    """x: (M, K); w_t: (K, N) pre-transposed; bias: (N,)."""
    M, K = x.shape
    K2, N = w_t.shape
    assert K == K2
    tm = _pick_tile(M, tm_target, 8)
    tn = _pick_tile(N, tn_target, 128)
    tk = _pick_tile(K, tk_target, 128)
    dsz = x.dtype.itemsize

    est = (2 * (tm * tk + tk * tn + tn + tm * tn) * dsz   # double-buffered blocks
           + tm * tn * 4)                                 # f32 accumulator
    cost = pl.CostEstimate(
        flops=2 * M * N * K,
        transcendentals=0,
        bytes_accessed=(M * K + K * N + M * N + N) * dsz)

    return pl.pallas_call(
        functools.partial(_linear_kernel, apply_relu=apply_relu),
        out_shape=jax.ShapeDtypeStruct((M, N), x.dtype),
        grid=(M // tm, N // tn, K // tk),
        in_specs=[
            pl.BlockSpec((tm, tk), lambda i, j, k: (i, k)),
            pl.BlockSpec((tk, tn), lambda i, j, k: (k, j)),
            pl.BlockSpec((1, tn), lambda i, j, k: (0, j)),
        ],
        out_specs=pl.BlockSpec((tm, tn), lambda i, j, k: (i, j)),
        scratch_shapes=[pltpu.VMEM((tm, tn), jnp.float32)],
        compiler_params=pltpu.CompilerParams(
            dimension_semantics=("parallel", "parallel", "arbitrary"),
            vmem_limit_bytes=_vmem_limit(est)),
        cost_estimate=cost,
    )(x, w_t, bias.reshape(1, N))


# ---------------------------------------------------------------------------
# Attention core: all heads of one (batch, q-tile) per grid step
# ---------------------------------------------------------------------------

def _attn_kernel(q_ref, k_ref, v_ref, o_ref, w_ref, *, num_heads, head_dim):
    q2d = q_ref[0]                      # (tq, E)
    k2d = k_ref[0]                      # (S,  E)
    v2d = v_ref[0]                      # (S,  E)

    out_heads = []
    w_acc = None
    for h in range(num_heads):          # static unroll; num_heads is small
        sl = slice(h * head_dim, (h + 1) * head_dim)
        # scores = q_h @ k_h^T  (contraction on head_dim; NO 1/sqrt(d) scaling,
        # matching the PyTorch module which never applies self.scaling)
        s = lax.dot_general(q2d[:, sl], k2d[:, sl],
                            (((1,), (1,)), ((), ())),
                            preferred_element_type=jnp.float32)      # (tq, S)
        s = s - jnp.max(s, axis=-1, keepdims=True)
        p = jnp.exp(s)
        p = p * pl.reciprocal(jnp.sum(p, axis=-1, keepdims=True), approx=True)
        w_acc = p if w_acc is None else w_acc + p
        out_heads.append(jnp.dot(p.astype(v2d.dtype), v2d[:, sl],
                                 preferred_element_type=jnp.float32))  # (tq, D)

    # lane-dense (tq, E) store: heads concatenated along the last (lane) axis
    o_ref[0] = jnp.concatenate(out_heads, axis=-1).astype(o_ref.dtype)
    # head-averaged attention weights (need_weights=True); /H folded to one mul
    w_ref[0] = (w_acc * (1.0 / num_heads)).astype(w_ref.dtype)


# ---------------------------------------------------------------------------
# Wrapper
# ---------------------------------------------------------------------------

def dman_attention_forward(query, params, *, num_heads):
    """query: (tgt_len, bsz, embed_dim). Returns (attn, avg_attn_weights)."""
    tgt_len, bsz, embed_dim = query.shape
    head_dim = embed_dim // num_heads
    assert head_dim * num_heads == embed_dim
    n = tgt_len * bsz
    dsz = query.dtype.itemsize

    # Pre-transposed weights: feed the MXU (K, N)-layout tiles, no in-kernel .T.
    w_in_t = params["in_proj_weight"].T           # (E, 3E)
    w_out_t = params["out_proj_weight"].T         # (E, E)

    # (T, B, E) -> (B, T, E) once; every later activation stays lane-dense and the
    # row order matches the per-batch blocks the attention kernel wants.
    x = jnp.transpose(query, (1, 0, 2)).reshape(n, embed_dim)

    # ---- in_proj: qkv = x @ W_in^T + b  (tiled + pipelined) -------------------
    qkv = _linear(x, w_in_t, params["in_proj_bias"])            # (B*T, 3E)

    # ---- attention core -------------------------------------------------------
    tq = _pick_tile(tgt_len, 256, 8)

    if embed_dim % 128 == 0:
        # q/k/v are column-blocks of the fused qkv array: address them via the
        # BlockSpec block index along the last axis => zero XLA slice copies.
        qkv_b = qkv.reshape(bsz, tgt_len, 3 * embed_dim)
        q_in = k_in = v_in = qkv_b
        q_map = lambda b, i: (b, i, 0)
        k_map = lambda b, i: (b, 0, 1)
        v_map = lambda b, i: (b, 0, 2)
    else:
        # Fallback for E not a multiple of 128 (last-dim block alignment rule).
        q_in = qkv[:, :embed_dim].reshape(bsz, tgt_len, embed_dim)
        k_in = qkv[:, embed_dim:2 * embed_dim].reshape(bsz, tgt_len, embed_dim)
        v_in = qkv[:, 2 * embed_dim:].reshape(bsz, tgt_len, embed_dim)
        q_map = lambda b, i: (b, i, 0)
        k_map = lambda b, i: (b, 0, 0)
        v_map = lambda b, i: (b, 0, 0)

    attn_est = (2 * (tq + 2 * tgt_len) * embed_dim * dsz          # q/k/v blocks (x2)
                + 2 * (tq * embed_dim * dsz + tq * tgt_len * 4)   # output blocks (x2)
                + 4 * num_heads * tq * tgt_len * 4)               # in-kernel scores
    attn_cost = pl.CostEstimate(
        flops=4 * bsz * num_heads * tgt_len * tgt_len * head_dim,
        transcendentals=bsz * num_heads * tgt_len * tgt_len,
        bytes_accessed=(4 * n * embed_dim) * dsz + bsz * tgt_len * tgt_len * 4)

    attn_bte, avg_w = pl.pallas_call(
        functools.partial(_attn_kernel, num_heads=num_heads, head_dim=head_dim),
        out_shape=(
            jax.ShapeDtypeStruct((bsz, tgt_len, embed_dim), query.dtype),
            jax.ShapeDtypeStruct((bsz, tgt_len, tgt_len), jnp.float32),
        ),
        grid=(bsz, tgt_len // tq),
        in_specs=[
            pl.BlockSpec((1, tq, embed_dim), q_map),
            pl.BlockSpec((1, tgt_len, embed_dim), k_map),
            pl.BlockSpec((1, tgt_len, embed_dim), v_map),
        ],
        out_specs=(
            pl.BlockSpec((1, tq, embed_dim), lambda b, i: (b, i, 0)),
            pl.BlockSpec((1, tq, tgt_len), lambda b, i: (b, i, 0)),
        ),
        compiler_params=pltpu.CompilerParams(
            dimension_semantics=("parallel", "parallel"),
            vmem_limit_bytes=_vmem_limit(attn_est)),
        cost_estimate=attn_cost,
    )(q_in, k_in, v_in)

    # ---- ReLU + out_proj (fused, tiled + pipelined) ---------------------------
    out2d = _linear(attn_bte.reshape(n, embed_dim), w_out_t,
                    params["out_proj_bias"], apply_relu=True)

    attn_out = jnp.transpose(out2d.reshape(bsz, tgt_len, embed_dim), (1, 0, 2))
    return attn_out, avg_w


# ---------------------------------------------------------------------------
# Deterministic parameter init (mimicking reset_parameters shapes)
# ---------------------------------------------------------------------------

def init_params(key, embed_dim):
    k1, k2 = jax.random.split(key)
    # xavier_uniform_ for in_proj_weight (3E, E)
    limit_in = (6.0 / (embed_dim + 3 * embed_dim)) ** 0.5
    in_proj_weight = jax.random.uniform(
        k1, (3 * embed_dim, embed_dim), jnp.float32, -limit_in, limit_in)
    # kaiming_uniform_ for out_proj.weight (E, E)
    limit_out = (6.0 / embed_dim) ** 0.5
    out_proj_weight = jax.random.uniform(
        k2, (embed_dim, embed_dim), jnp.float32, -limit_out, limit_out)
    return {
        "in_proj_weight": in_proj_weight,
        "in_proj_bias": jnp.zeros((3 * embed_dim,), jnp.float32),
        "out_proj_weight": out_proj_weight,
        "out_proj_bias": jnp.zeros((embed_dim,), jnp.float32),
    }


# ---------------------------------------------------------------------------
# Pure-JAX reference (same math as the PyTorch forward, eval mode)
# ---------------------------------------------------------------------------

def reference_forward(query, params, *, num_heads):
    tgt_len, bsz, embed_dim = query.shape
    head_dim = embed_dim // num_heads
    qkv = query @ params["in_proj_weight"].T + params["in_proj_bias"]
    q, k, v = jnp.split(qkv, 3, axis=-1)

    def to_bh(t):
        return t.reshape(tgt_len, bsz * num_heads, head_dim).transpose(1, 0, 2)

    q, k, v = to_bh(q), to_bh(k), to_bh(v)
    s = jnp.einsum("btd,bsd->bts", q, k)        # no scaling (as in the torch code)
    p = jax.nn.softmax(s, axis=-1)
    attn = jnp.einsum("bts,bsd->btd", p, v)
    attn = attn.transpose(1, 0, 2).reshape(tgt_len, bsz, embed_dim)
    attn = jnp.maximum(attn, 0.0)
    attn = attn @ params["out_proj_weight"].T + params["out_proj_bias"]
    w = p.reshape(bsz, num_heads, tgt_len, tgt_len).sum(axis=1) / num_heads
    return attn, w


# ---------------------------------------------------------------------------

if __name__ == "__main__":
    tgt_len, bsz, embed_dim, num_heads = 16, 2, 128, 4

    key = jax.random.PRNGKey(0)
    kq, kp = jax.random.split(key)
    query = jax.random.normal(kq, (tgt_len, bsz, embed_dim), jnp.float32)
    params = init_params(kp, embed_dim)

    fwd = jax.jit(functools.partial(dman_attention_forward, num_heads=num_heads))
    attn, avg_w = fwd(query, params)
    jax.block_until_ready((attn, avg_w))

    ref_attn, ref_w = reference_forward(query, params, num_heads=num_heads)
    assert attn.shape == (tgt_len, bsz, embed_dim)
    assert avg_w.shape == (bsz, tgt_len, tgt_len)
    assert jnp.allclose(attn, ref_attn, rtol=2e-2, atol=2e-2), \
        float(jnp.max(jnp.abs(attn - ref_attn)))
    assert jnp.allclose(avg_w, ref_w, rtol=2e-2, atol=2e-2), \
        float(jnp.max(jnp.abs(avg_w - ref_w)))

    print("KERNEL_OK")
</pallas_src>

<mosaic_0001>
module attributes {stable_mosaic.version = 11 : i64} {
  func.func @_linear_kernel(%arg0: i32, %arg1: i32, %arg2: i32, %arg3: memref<32x128xf32, #tpu.memory_space<vmem>>, %arg4: memref<128x128xf32, #tpu.memory_space<vmem>>, %arg5: memref<1x128xf32, #tpu.memory_space<vmem>>, %arg6: memref<32x128xf32, #tpu.memory_space<vmem>>, %arg7: memref<32x128xf32, #tpu.memory_space<vmem>>) attributes {dimension_semantics = [#tpu.dimension_semantics<parallel>, #tpu.dimension_semantics<parallel>, #tpu.dimension_semantics<arbitrary>], iteration_bounds = array<i64: 1, 3, 1>, scalar_prefetch = 0 : i64, scratch_operands = 1 : i64, tpu.core_type = #tpu.core_type<tc>, window_params = [{transform_indices = @transform_0, window_bounds = array<i64: 32, 128>}, {transform_indices = @transform_1, window_bounds = array<i64: 128, 128>}, {transform_indices = @transform_2, window_bounds = array<i64: 1, 128>}, {transform_indices = @transform_3, window_bounds = array<i64: 32, 128>}]} {
    %c0_i32 = arith.constant 0 : i32
    %0 = arith.cmpi eq, %arg2, %c0_i32 : i32
    %1 = arith.extui %0 : i1 to i32
    %c0_i32_0 = arith.constant 0 : i32
    %2 = arith.cmpi ne, %1, %c0_i32_0 : i32
    scf.if %2 {
      %cst_10 = arith.constant 0.000000e+00 : f32
      %12 = vector.broadcast %cst_10 : f32 to vector<32x128xf32>
      %c0_11 = arith.constant 0 : index
      %c0_12 = arith.constant 0 : index
      %13 = vector.load %arg7[%c0_11, %c0_12] : memref<32x128xf32, #tpu.memory_space<vmem>>, vector<32x128xf32>
      tpu.vector_store %arg7[%c0_11, %c0_12], %12 {strides = array<i32>} : memref<32x128xf32, #tpu.memory_space<vmem>>, vector<32x128xf32>,
    } else {
    }
    %c0 = arith.constant 0 : index
    %c0_1 = arith.constant 0 : index
    %3 = vector.load %arg3[%c0, %c0_1] : memref<32x128xf32, #tpu.memory_space<vmem>>, vector<32x128xf32>
    %c0_2 = arith.constant 0 : index
    %c0_3 = arith.constant 0 : index
    %4 = vector.load %arg7[%c0_2, %c0_3] : memref<32x128xf32, #tpu.memory_space<vmem>>, vector<32x128xf32>
    %c0_4 = arith.constant 0 : index
    %c0_5 = arith.constant 0 : index
    %5 = vector.load %arg4[%c0_4, %c0_5] : memref<128x128xf32, #tpu.memory_space<vmem>>, vector<128x128xf32>
    %cst = arith.constant dense<0.000000e+00> : vector<32x128xf32>
    %6 = tpu.matmul %3, %5, %cst {dimension_numbers = #tpu.dot_dimension_numbers<[1], [0], [0], [1], [0, 0, 1, 1], [], []>} : vector<32x128xf32>, vector<128x128xf32>, vector<32x128xf32> -> vector<32x128xf32>
    %7 = arith.addf %4, %6 : vector<32x128xf32>
    %c0_6 = arith.constant 0 : index
    %c0_7 = arith.constant 0 : index
    %8 = vector.load %arg7[%c0_6, %c0_7] : memref<32x128xf32, #tpu.memory_space<vmem>>, vector<32x128xf32>
    tpu.vector_store %arg7[%c0_6, %c0_7], %7 {strides = array<i32>} : memref<32x128xf32, #tpu.memory_space<vmem>>, vector<32x128xf32>,
    %c0_i32_8 = arith.constant 0 : i32
    %9 = arith.cmpi eq, %arg2, %c0_i32_8 : i32
    %10 = arith.extui %9 : i1 to i32
    %c0_i32_9 = arith.constant 0 : i32
    %11 = arith.cmpi ne, %10, %c0_i32_9 : i32
    scf.if %11 {
      %c0_10 = arith.constant 0 : index
      %c0_11 = arith.constant 0 : index
      %12 = vector.load %arg7[%c0_10, %c0_11] : memref<32x128xf32, #tpu.memory_space<vmem>>, vector<32x128xf32>
      %c0_12 = arith.constant 0 : index
      %c0_13 = arith.constant 0 : index
      %13 = vector.load %arg5[%c0_12, %c0_13] : memref<1x128xf32, #tpu.memory_space<vmem>>, vector<1x128xf32>
      %14 = vector.broadcast %13 : vector<1x128xf32> to vector<32x128xf32>
      %15 = arith.addf %12, %14 : vector<32x128xf32>
      %c0_14 = arith.constant 0 : index
      %c0_15 = arith.constant 0 : index
      %16 = vector.load %arg6[%c0_14, %c0_15] : memref<32x128xf32, #tpu.memory_space<vmem>>, vector<32x128xf32>
      tpu.vector_store %arg6[%c0_14, %c0_15], %15 {strides = array<i32>} : memref<32x128xf32, #tpu.memory_space<vmem>>, vector<32x128xf32>,
    } else {
    }
    return
  }
  func.func @transform_0(%arg0: i32, %arg1: i32, %arg2: i32) -> (i32, i32) {
    %c0_i32 = arith.constant 0 : i32
    return %arg0, %arg2 : i32, i32
  }
  func.func @transform_1(%arg0: i32, %arg1: i32, %arg2: i32) -> (i32, i32) {
    %c0_i32 = arith.constant 0 : i32
    return %arg2, %arg1 : i32, i32
  }
  func.func @transform_2(%arg0: i32, %arg1: i32, %arg2: i32) -> (i32, i32) {
    %c0_i32 = arith.constant 0 : i32
    %c0_i32_0 = arith.constant 0 : i32
    return %c0_i32, %arg1 : i32, i32
  }
  func.func @transform_3(%arg0: i32, %arg1: i32, %arg2: i32) -> (i32, i32) {
    %c0_i32 = arith.constant 0 : i32
    return %arg0, %arg1 : i32, i32
  }
}

module attributes {stable_mosaic.version = 11 : i64} {
  func.func @_linear_kernel(%arg0: i32, %arg1: i32, %arg2: i32, %arg3: memref<32x128xf32, #tpu.memory_space<vmem>>, %arg4: memref<128x128xf32, #tpu.memory_space<vmem>>, %arg5: memref<1x128xf32, #tpu.memory_space<vmem>>, %arg6: memref<32x128xf32, #tpu.memory_space<vmem>>, %arg7: memref<32x128xf32, #tpu.memory_space<vmem>>) attributes {dimension_semantics = [#tpu.dimension_semantics<parallel>, #tpu.dimension_semantics<parallel>, #tpu.dimension_semantics<arbitrary>], iteration_bounds = array<i64: 1, 1, 1>, scalar_prefetch = 0 : i64, scratch_operands = 1 : i64, tpu.core_type = #tpu.core_type<tc>, window_params = [{transform_indices = @transform_0, window_bounds = array<i64: 32, 128>}, {transform_indices = @transform_1, window_bounds = array<i64: 128, 128>}, {transform_indices = @transform_2, window_bounds = array<i64: 1, 128>}, {transform_indices = @transform_3, window_bounds = array<i64: 32, 128>}]} {
    %c0_i32 = arith.constant 0 : i32
    %0 = arith.cmpi eq, %arg2, %c0_i32 : i32
    %1 = arith.extui %0 : i1 to i32
    %c0_i32_0 = arith.constant 0 : i32
    %2 = arith.cmpi ne, %1, %c0_i32_0 : i32
    scf.if %2 {
      %cst_11 = arith.constant 0.000000e+00 : f32
      %14 = vector.broadcast %cst_11 : f32 to vector<32x128xf32>
      %c0_12 = arith.constant 0 : index
      %c0_13 = arith.constant 0 : index
      %15 = vector.load %arg7[%c0_12, %c0_13] : memref<32x128xf32, #tpu.memory_space<vmem>>, vector<32x128xf32>
      tpu.vector_store %arg7[%c0_12, %c0_13], %14 {strides = array<i32>} : memref<32x128xf32, #tpu.memory_space<vmem>>, vector<32x128xf32>,
    } else {
    }
    %c0 = arith.constant 0 : index
    %c0_1 = arith.constant 0 : index
    %3 = vector.load %arg3[%c0, %c0_1] : memref<32x128xf32, #tpu.memory_space<vmem>>, vector<32x128xf32>
    %cst = arith.constant 0.000000e+00 : f32
    %4 = vector.broadcast %cst : f32 to vector<32x128xf32>
    %5 = arith.maximumf %3, %4 : vector<32x128xf32>
    %c0_2 = arith.constant 0 : index
    %c0_3 = arith.constant 0 : index
    %6 = vector.load %arg7[%c0_2, %c0_3] : memref<32x128xf32, #tpu.memory_space<vmem>>, vector<32x128xf32>
    %c0_4 = arith.constant 0 : index
    %c0_5 = arith.constant 0 : index
    %7 = vector.load %arg4[%c0_4, %c0_5] : memref<128x128xf32, #tpu.memory_space<vmem>>, vector<128x128xf32>
    %cst_6 = arith.constant dense<0.000000e+00> : vector<32x128xf32>
    %8 = tpu.matmul %5, %7, %cst_6 {dimension_numbers = #tpu.dot_dimension_numbers<[1], [0], [0], [1], [0, 0, 1, 1], [], []>} : vector<32x128xf32>, vector<128x128xf32>, vector<32x128xf32> -> vector<32x128xf32>
    %9 = arith.addf %6, %8 : vector<32x128xf32>
    %c0_7 = arith.constant 0 : index
    %c0_8 = arith.constant 0 : index
    %10 = vector.load %arg7[%c0_7, %c0_8] : memref<32x128xf32, #tpu.memory_space<vmem>>, vector<32x128xf32>
    tpu.vector_store %arg7[%c0_7, %c0_8], %9 {strides = array<i32>} : memref<32x128xf32, #tpu.memory_space<vmem>>, vector<32x128xf32>,
    %c0_i32_9 = arith.constant 0 : i32
    %11 = arith.cmpi eq, %arg2, %c0_i32_9 : i32
    %12 = arith.extui %11 : i1 to i32
    %c0_i32_10 = arith.constant 0 : i32
    %13 = arith.cmpi ne, %12, %c0_i32_10 : i32
    scf.if %13 {
      %c0_11 = arith.constant 0 : index
      %c0_12 = arith.constant 0 : index
      %14 = vector.load %arg7[%c0_11, %c0_12] : memref<32x128xf32, #tpu.memory_space<vmem>>, vector<32x128xf32>
      %c0_13 = arith.constant 0 : index
      %c0_14 = arith.constant 0 : index
      %15 = vector.load %arg5[%c0_13, %c0_14] : memref<1x128xf32, #tpu.memory_space<vmem>>, vector<1x128xf32>
      %16 = vector.broadcast %15 : vector<1x128xf32> to vector<32x128xf32>
      %17 = arith.addf %14, %16 : vector<32x128xf32>
      %c0_15 = arith.constant 0 : index
      %c0_16 = arith.constant 0 : index
      %18 = vector.load %arg6[%c0_15, %c0_16] : memref<32x128xf32, #tpu.memory_space<vmem>>, vector<32x128xf32>
      tpu.vector_store %arg6[%c0_15, %c0_16], %17 {strides = array<i32>} : memref<32x128xf32, #tpu.memory_space<vmem>>, vector<32x128xf32>,
    } else {
    }
    return
  }
  func.func @transform_0(%arg0: i32, %arg1: i32, %arg2: i32) -> (i32, i32) {
    %c0_i32 = arith.constant 0 : i32
    return %arg0, %arg2 : i32, i32
  }
  func.func @transform_1(%arg0: i32, %arg1: i32, %arg2: i32) -> (i32, i32) {
    %c0_i32 = arith.constant 0 : i32
    return %arg2, %arg1 : i32, i32
  }
  func.func @transform_2(%arg0: i32, %arg1: i32, %arg2: i32) -> (i32, i32) {
    %c0_i32 = arith.constant 0 : i32
    %c0_i32_0 = arith.constant 0 : i32
    return %c0_i32, %arg1 : i32, i32
  }
  func.func @transform_3(%arg0: i32, %arg1: i32, %arg2: i32) -> (i32, i32) {
    %c0_i32 = arith.constant 0 : i32
    return %arg0, %arg1 : i32, i32
  }
}

module attributes {stable_mosaic.version = 11 : i64} {
  func.func @_attn_kernel(%arg0: i32, %arg1: i32, %arg2: memref<1x16x128xf32, #tpu.memory_space<vmem>>, %arg3: memref<1x16x128xf32, #tpu.memory_space<vmem>>, %arg4: memref<1x16x128xf32, #tpu.memory_space<vmem>>, %arg5: memref<1x16x128xf32, #tpu.memory_space<vmem>>, %arg6: memref<1x16x16xf32, #tpu.memory_space<vmem>>) attributes {dimension_semantics = [#tpu.dimension_semantics<parallel>, #tpu.dimension_semantics<parallel>], iteration_bounds = array<i64: 2, 1>, scalar_prefetch = 0 : i64, scratch_operands = 0 : i64, tpu.core_type = #tpu.core_type<tc>, window_params = [{transform_indices = @transform_0, window_bounds = array<i64: 1, 16, 128>}, {transform_indices = @transform_1, window_bounds = array<i64: 1, 16, 128>}, {transform_indices = @transform_2, window_bounds = array<i64: 1, 16, 128>}, {transform_indices = @transform_3, window_bounds = array<i64: 1, 16, 128>}, {transform_indices = @transform_4, window_bounds = array<i64: 1, 16, 16>}]} {
    %c0 = arith.constant 0 : index
    %c0_0 = arith.constant 0 : index
    %c0_1 = arith.constant 0 : index
    %0 = vector.load %arg2[%c0, %c0_0, %c0_1] : memref<1x16x128xf32, #tpu.memory_space<vmem>>, vector<1x16x128xf32>
    %1 = vector.shape_cast %0 : vector<1x16x128xf32> to vector<16x128xf32>
    %c0_2 = arith.constant 0 : index
    %c0_3 = arith.constant 0 : index
    %c0_4 = arith.constant 0 : index
    %2 = vector.load %arg3[%c0_2, %c0_3, %c0_4] : memref<1x16x128xf32, #tpu.memory_space<vmem>>, vector<1x16x128xf32>
    %3 = vector.shape_cast %2 : vector<1x16x128xf32> to vector<16x128xf32>
    %c0_5 = arith.constant 0 : index
    %c0_6 = arith.constant 0 : index
    %c0_7 = arith.constant 0 : index
    %4 = vector.load %arg4[%c0_5, %c0_6, %c0_7] : memref<1x16x128xf32, #tpu.memory_space<vmem>>, vector<1x16x128xf32>
    %5 = vector.shape_cast %4 : vector<1x16x128xf32> to vector<16x128xf32>
    %6 = vector.extract_strided_slice %1 {offsets = [0, 0], sizes = [16, 32], strides = [1, 1]} : vector<16x128xf32> to vector<16x32xf32>
    %7 = vector.extract_strided_slice %3 {offsets = [0, 0], sizes = [16, 32], strides = [1, 1]} : vector<16x128xf32> to vector<16x32xf32>
    %cst = arith.constant dense<0.000000e+00> : vector<16x16xf32>
    %8 = tpu.matmul %6, %7, %cst {dimension_numbers = #tpu.dot_dimension_numbers<[1], [1], [0], [0], [0, 0, 1, 0], [], []>} : vector<16x32xf32>, vector<16x32xf32>, vector<16x16xf32> -> vector<16x16xf32>
    %cst_8 = arith.constant dense<0xFF800000> : vector<16xf32>
    %9 = vector.multi_reduction <maximumf>, %8, %cst_8 [1] : vector<16x16xf32> to vector<16xf32>
    %10 = vector.shape_cast %9 : vector<16xf32> to vector<16x1xf32>
    %11 = vector.broadcast %10 : vector<16x1xf32> to vector<16x16xf32>
    %12 = arith.subf %8, %11 : vector<16x16xf32>
    %13 = math.exp %12 : vector<16x16xf32>
    %cst_9 = arith.constant dense<0.000000e+00> : vector<16xf32>
    %14 = vector.multi_reduction <add>, %13, %cst_9 [1] : vector<16x16xf32> to vector<16xf32>
    %15 = vector.shape_cast %14 : vector<16xf32> to vector<16x1xf32>
    %16 = tpu.reciprocal %15 {approx = true} : vector<16x1xf32> -> vector<16x1xf32>
    %17 = vector.broadcast %16 : vector<16x1xf32> to vector<16x16xf32>
    %18 = arith.mulf %13, %17 : vector<16x16xf32>
    %19 = vector.extract_strided_slice %5 {offsets = [0, 0], sizes = [16, 32], strides = [1, 1]} : vector<16x128xf32> to vector<16x32xf32>
    %cst_10 = arith.constant dense<0.000000e+00> : vector<16x32xf32>
    %20 = tpu.matmul %18, %19, %cst_10 {dimension_numbers = #tpu.dot_dimension_numbers<[1], [0], [0], [1], [0, 0, 1, 1], [], []>} : vector<16x16xf32>, vector<16x32xf32>, vector<16x32xf32> -> vector<16x32xf32>
    %21 = vector.extract_strided_slice %1 {offsets = [0, 32], sizes = [16, 32], strides = [1, 1]} : vector<16x128xf32> to vector<16x32xf32>
    %22 = vector.extract_strided_slice %3 {offsets = [0, 32], sizes = [16, 32], strides = [1, 1]} : vector<16x128xf32> to vector<16x32xf32>
    %cst_11 = arith.constant dense<0.000000e+00> : vector<16x16xf32>
    %23 = tpu.matmul %21, %22, %cst_11 {dimension_numbers = #tpu.dot_dimension_numbers<[1], [1], [0], [0], [0, 0, 1, 0], [], []>} : vector<16x32xf32>, vector<16x32xf32>, vector<16x16xf32> -> vector<16x16xf32>
    %cst_12 = arith.constant dense<0xFF800000> : vector<16xf32>
    %24 = vector.multi_reduction <maximumf>, %23, %cst_12 [1] : vector<16x16xf32> to vector<16xf32>
    %25 = vector.shape_cast %24 : vector<16xf32> to vector<16x1xf32>
    %26 = vector.broadcast %25 : vector<16x1xf32> to vector<16x16xf32>
    %27 = arith.subf %23, %26 : vector<16x16xf32>
    %28 = math.exp %27 : vector<16x16xf32>
    %cst_13 = arith.constant dense<0.000000e+00> : vector<16xf32>
    %29 = vector.multi_reduction <add>, %28, %cst_13 [1] : vector<16x16xf32> to vector<16xf32>
    %30 = vector.shape_cast %29 : vector<16xf32> to vector<16x1xf32>
    %31 = tpu.reciprocal %30 {approx = true} : vector<16x1xf32> -> vector<16x1xf32>
    %32 = vector.broadcast %31 : vector<16x1xf32> to vector<16x16xf32>
    %33 = arith.mulf %28, %32 : vector<16x16xf32>
    %34 = arith.addf %18, %33 : vector<16x16xf32>
    %35 = vector.extract_strided_slice %5 {offsets = [0, 32], sizes = [16, 32], strides = [1, 1]} : vector<16x128xf32> to vector<16x32xf32>
    %cst_14 = arith.constant dense<0.000000e+00> : vector<16x32xf32>
    %36 = tpu.matmul %33, %35, %cst_14 {dimension_numbers = #tpu.dot_dimension_numbers<[1], [0], [0], [1], [0, 0, 1, 1], [], []>} : vector<16x16xf32>, vector<16x32xf32>, vector<16x32xf32> -> vector<16x32xf32>
    %37 = vector.extract_strided_slice %1 {offsets = [0, 64], sizes = [16, 32], strides = [1, 1]} : vector<16x128xf32> to vector<16x32xf32>
    %38 = vector.extract_strided_slice %3 {offsets = [0, 64], sizes = [16, 32], strides = [1, 1]} : vector<16x128xf32> to vector<16x32xf32>
    %cst_15 = arith.constant dense<0.000000e+00> : vector<16x16xf32>
    %39 = tpu.matmul %37, %38, %cst_15 {dimension_numbers = #tpu.dot_dimension_numbers<[1], [1], [0], [0], [0, 0, 1, 0], [], []>} : vector<16x32xf32>, vector<16x32xf32>, vector<16x16xf32> -> vector<16x16xf32>
    %cst_16 = arith.constant dense<0xFF800000> : vector<16xf32>
    %40 = vector.multi_reduction <maximumf>, %39, %cst_16 [1] : vector<16x16xf32> to vector<16xf32>
    %41 = vector.shape_cast %40 : vector<16xf32> to vector<16x1xf32>
    %42 = vector.broadcast %41 : vector<16x1xf32> to vector<16x16xf32>
    %43 = arith.subf %39, %42 : vector<16x16xf32>
    %44 = math.exp %43 : vector<16x16xf32>
    %cst_17 = arith.constant dense<0.000000e+00> : vector<16xf32>
    %45 = vector.multi_reduction <add>, %44, %cst_17 [1] : vector<16x16xf32> to vector<16xf32>
    %46 = vector.shape_cast %45 : vector<16xf32> to vector<16x1xf32>
    %47 = tpu.reciprocal %46 {approx = true} : vector<16x1xf32> -> vector<16x1xf32>
    %48 = vector.broadcast %47 : vector<16x1xf32> to vector<16x16xf32>
    %49 = arith.mulf %44, %48 : vector<16x16xf32>
    %50 = arith.addf %34, %49 : vector<16x16xf32>
    %51 = vector.extract_strided_slice %5 {offsets = [0, 64], sizes = [16, 32], strides = [1, 1]} : vector<16x128xf32> to vector<16x32xf32>
    %cst_18 = arith.constant dense<0.000000e+00> : vector<16x32xf32>
    %52 = tpu.matmul %49, %51, %cst_18 {dimension_numbers = #tpu.dot_dimension_numbers<[1], [0], [0], [1], [0, 0, 1, 1], [], []>} : vector<16x16xf32>, vector<16x32xf32>, vector<16x32xf32> -> vector<16x32xf32>
    %53 = vector.extract_strided_slice %1 {offsets = [0, 96], sizes = [16, 32], strides = [1, 1]} : vector<16x128xf32> to vector<16x32xf32>
    %54 = vector.extract_strided_slice %3 {offsets = [0, 96], sizes = [16, 32], strides = [1, 1]} : vector<16x128xf32> to vector<16x32xf32>
    %cst_19 = arith.constant dense<0.000000e+00> : vector<16x16xf32>
    %55 = tpu.matmul %53, %54, %cst_19 {dimension_numbers = #tpu.dot_dimension_numbers<[1], [1], [0], [0], [0, 0, 1, 0], [], []>} : vector<16x32xf32>, vector<16x32xf32>, vector<16x16xf32> -> vector<16x16xf32>
    %cst_20 = arith.constant dense<0xFF800000> : vector<16xf32>
    %56 = vector.multi_reduction <maximumf>, %55, %cst_20 [1] : vector<16x16xf32> to vector<16xf32>
    %57 = vector.shape_cast %56 : vector<16xf32> to vector<16x1xf32>
    %58 = vector.broadcast %57 : vector<16x1xf32> to vector<16x16xf32>
    %59 = arith.subf %55, %58 : vector<16x16xf32>
    %60 = math.exp %59 : vector<16x16xf32>
    %cst_21 = arith.constant dense<0.000000e+00> : vector<16xf32>
    %61 = vector.multi_reduction <add>, %60, %cst_21 [1] : vector<16x16xf32> to vector<16xf32>
    %62 = vector.shape_cast %61 : vector<16xf32> to vector<16x1xf32>
    %63 = tpu.reciprocal %62 {approx = true} : vector<16x1xf32> -> vector<16x1xf32>
    %64 = vector.broadcast %63 : vector<16x1xf32> to vector<16x16xf32>
    %65 = arith.mulf %60, %64 : vector<16x16xf32>
    %66 = arith.addf %50, %65 : vector<16x16xf32>
    %67 = vector.extract_strided_slice %5 {offsets = [0, 96], sizes = [16, 32], strides = [1, 1]} : vector<16x128xf32> to vector<16x32xf32>
    %cst_22 = arith.constant dense<0.000000e+00> : vector<16x32xf32>
    %68 = tpu.matmul %65, %67, %cst_22 {dimension_numbers = #tpu.dot_dimension_numbers<[1], [0], [0], [1], [0, 0, 1, 1], [], []>} : vector<16x16xf32>, vector<16x32xf32>, vector<16x32xf32> -> vector<16x32xf32>
    %69 = tpu.concatenate %20, %36, %52, %68 in 1 : vector<16x32xf32>, vector<16x32xf32>, vector<16x32xf32>, vector<16x32xf32> -> vector<16x128xf32>
    %c0_23 = arith.constant 0 : index
    %c0_24 = arith.constant 0 : index
    %c0_25 = arith.constant 0 : index
    %70 = vector.load %arg5[%c0_23, %c0_24, %c0_25] : memref<1x16x128xf32, #tpu.memory_space<vmem>>, vector<1x16x128xf32>
    %71 = vector.shape_cast %70 : vector<1x16x128xf32> to vector<16x128xf32>
    %72 = vector.shape_cast %69 : vector<16x128xf32> to vector<1x16x128xf32>
    tpu.vector_store %arg5[%c0_23, %c0_24, %c0_25], %72 {strides = array<i32>} : memref<1x16x128xf32, #tpu.memory_space<vmem>>, vector<1x16x128xf32>,
    %cst_26 = arith.constant 2.500000e-01 : f32
    %73 = vector.broadcast %cst_26 : f32 to vector<16x16xf32>
    %74 = arith.mulf %66, %73 : vector<16x16xf32>
    %c0_27 = arith.constant 0 : index
    %c0_28 = arith.constant 0 : index
    %c0_29 = arith.constant 0 : index
    %75 = vector.load %arg6[%c0_27, %c0_28, %c0_29] : memref<1x16x16xf32, #tpu.memory_space<vmem>>, vector<1x16x16xf32>
    %76 = vector.shape_cast %75 : vector<1x16x16xf32> to vector<16x16xf32>
    %77 = vector.shape_cast %74 : vector<16x16xf32> to vector<1x16x16xf32>
    tpu.vector_store %arg6[%c0_27, %c0_28, %c0_29], %77 {strides = array<i32>} : memref<1x16x16xf32, #tpu.memory_space<vmem>>, vector<1x16x16xf32>,
    return
  }
  func.func @transform_0(%arg0: i32, %arg1: i32) -> (i32, i32, i32) {
    %c0_i32 = arith.constant 0 : i32
    %c0_i32_0 = arith.constant 0 : i32
    return %arg0, %arg1, %c0_i32 : i32, i32, i32
  }
  func.func @transform_1(%arg0: i32, %arg1: i32) -> (i32, i32, i32) {
    %c0_i32 = arith.constant 0 : i32
    %c1_i32 = arith.constant 1 : i32
    %c0_i32_0 = arith.constant 0 : i32
    return %arg0, %c0_i32, %c1_i32 : i32, i32, i32
  }
  func.func @transform_2(%arg0: i32, %arg1: i32) -> (i32, i32, i32) {
    %c0_i32 = arith.constant 0 : i32
    %c2_i32 = arith.constant 2 : i32
    %c0_i32_0 = arith.constant 0 : i32
    return %arg0, %c0_i32, %c2_i32 : i32, i32, i32
  }
  func.func @transform_3(%arg0: i32, %arg1: i32) -> (i32, i32, i32) {
    %c0_i32 = arith.constant 0 : i32
    %c0_i32_0 = arith.constant 0 : i32
    return %arg0, %arg1, %c0_i32 : i32, i32, i32
  }
  func.func @transform_4(%arg0: i32, %arg1: i32) -> (i32, i32, i32) {
    %c0_i32 = arith.constant 0 : i32
    %c0_i32_0 = arith.constant 0 : i32
    return %arg0, %arg1, %c0_i32 : i32, i32, i32
  }
}

</mosaic_0001>

<bundles_post_ra>
// kernel: dman_attention_forward.5
= control target key start
LH: loop header
LB: loop body
LE: loop exit
PB: predicated region body
PF: predicated region fallthrough
CT: control target
= control target key end

     0   :  { %s371_s1 = inlined_call_operand.vmem [shape: f32[128,128], index: 1, kind: input, shape index: {}]   ;;  %s372_s0 = inlined_call_operand.vmem [shape: f32[32,128], index: 0, kind: input, shape index: {}]   ;;  %s373_s2 = inlined_call_operand.vmem [shape: f32[1,128], index: 2, kind: input, shape index: {}]   ;;  %s374_s3 = inlined_call_operand.vmem [shape: f32[32,128], index: 3, kind: output, shape index: {}]  }
   0x1   :  { %v34_v0 = vld [vmem:[%s371_s1] sm:$0xff]  ;;  %v35_v1 = vld [vmem:[%s371_s1 + $0x8] sm:$0xff]  ;;  %v36_v2 = vld [vmem:[%s371_s1 + $0x10] sm:$0xff] }
   0x2   :  { %v228_v3 = vpack.c.bf16 %v35_v1, %v34_v0  ;;  %v37_v4 = vld [vmem:[%s371_s1 + $0x18] sm:$0xff]  ;;  %v38_v6 = vld [vmem:[%s371_s1 + $0x20] sm:$0xff]  ;;  %v39_v7 = vld [vmem:[%s371_s1 + $0x28] sm:$0xff] }
   0x3   :  { %v232_v5 = vpack.c.bf16 %v37_v4, %v36_v2  ;;  %v236_v8 = vpack.c.bf16 %v39_v7, %v38_v6  ;;  %v22_v9 = vld [vmem:[%s372_s0] sm:$0xff]  ;;  %v24_v10 = vld [vmem:[%s372_s0 + $0x10] sm:$0xff]  ;;  %v41_v12 = vld [vmem:[%s371_s1 + $0x38] sm:$0xff] }
   0x4   :  { %229 = vmatprep.subr.bf16.mxu0 %v228_v3  ;;  %260 = vmatprep.subr.bf16.mxu1 %v228_v3  ;;  %v40_v11 = vld [vmem:[%s371_s1 + $0x30] sm:$0xff]  ;;  %v26_v13 = vmax.f32 %v22_v9, 0.0  ;;  %v28_v14 = vmax.f32 %v24_v10, 0.0  ;;  %v42_v16 = vld [vmem:[%s371_s1 + $0x40] sm:$0xff]  ;;  %v43_v17 = vld [vmem:[%s371_s1 + $0x48] sm:$0xff] }
   0x5   :  { %231 = vmatpush3.bf16.msra.mxu0 %v228_v3  ;;  %268 = vmatpush3.bf16.msra.mxu1 %v228_v3  ;;  %v240_v15 = vpack.c.bf16 %v41_v12, %v40_v11  ;;  %v244_v18 = vpack.c.bf16 %v43_v17, %v42_v16  ;;  %v44_v19 = vld [vmem:[%s371_s1 + $0x50] sm:$0xff]  ;;  %v45_v20 = vld [vmem:[%s371_s1 + $0x58] sm:$0xff]  ;;  %v46_v22 = vld [vmem:[%s371_s1 + $0x60] sm:$0xff] }
   0x6   :  { %233 = vmatprep.subr.bf16.mxu0 %v232_v5  ;;  %261 = vmatprep.subr.bf16.mxu1 %v232_v5  ;;  %v248_v21 = vpack.c.bf16 %v45_v20, %v44_v19  ;;  %v47_v23 = vld [vmem:[%s371_s1 + $0x68] sm:$0xff]  ;;  %v48_v25 = vld [vmem:[%s371_s1 + $0x70] sm:$0xff]  ;;  %v49_v26 = vld [vmem:[%s371_s1 + $0x78] sm:$0xff] }
   0x7   :  { %222 = vmatprep.mubr.f32.mxu0 %v26_v13  ;;  %225 = vmatprep.mubr.f32.mxu1 %v28_v14  ;;  %v252_v24 = vpack.c.bf16 %v47_v23, %v46_v22  ;;  %v256_v27 = vpack.c.bf16 %v49_v26, %v48_v25  ;;  %v23_v28 = vld [vmem:[%s372_s0 + $0x8] sm:$0xff]  ;;  %v25_v29 = vld [vmem:[%s372_s0 + $0x18] sm:$0xff]  ;;  %v169_v32 = vld [vmem:[%s373_s2] ss:$0 sm:$0xff] }
   0x8   :  { %v27_v30 = vmax.f32 %v23_v28, 0.0  ;;  %v29_v31 = vmax.f32 %v25_v29, 0.0 }
   0x9   :  { %235 = vmatpush3.bf16.msra.mxu0 %v232_v5  ;;  %269 = vmatpush3.bf16.msra.mxu1 %v232_v5 }
   0xa   :  { %237 = vmatprep.subr.bf16.mxu0 %v236_v8  ;;  %262 = vmatprep.subr.bf16.mxu1 %v236_v8 }
   0xd   :  { %239 = vmatpush3.bf16.msra.mxu0 %v236_v8  ;;  %270 = vmatpush3.bf16.msra.mxu1 %v236_v8 }
   0xe   :  { %241 = vmatprep.subr.bf16.mxu0 %v240_v15  ;;  %263 = vmatprep.subr.bf16.mxu1 %v240_v15 }
  0x11   :  { %243 = vmatpush3.bf16.msra.mxu0 %v240_v15  ;;  %271 = vmatpush3.bf16.msra.mxu1 %v240_v15 }
  0x12   :  { %245 = vmatprep.subr.bf16.mxu0 %v244_v18  ;;  %264 = vmatprep.subr.bf16.mxu1 %v244_v18 }
  0x15   :  { %247 = vmatpush3.bf16.msra.mxu0 %v244_v18  ;;  %272 = vmatpush3.bf16.msra.mxu1 %v244_v18 }
  0x16   :  { %249 = vmatprep.subr.bf16.mxu0 %v248_v21  ;;  %265 = vmatprep.subr.bf16.mxu1 %v248_v21 }
  0x19   :  { %251 = vmatpush3.bf16.msra.mxu0 %v248_v21  ;;  %273 = vmatpush3.bf16.msra.mxu1 %v248_v21 }
  0x1a   :  { %253 = vmatprep.subr.bf16.mxu0 %v252_v24  ;;  %266 = vmatprep.subr.bf16.mxu1 %v252_v24 }
  0x1d   :  { %255 = vmatpush3.bf16.msra.mxu0 %v252_v24  ;;  %274 = vmatpush3.bf16.msra.mxu1 %v252_v24 }
  0x1e   :  { %257 = vmatprep.subr.bf16.mxu0 %v256_v27  ;;  %267 = vmatprep.subr.bf16.mxu1 %v256_v27 }
  0x21   :  { %259 = vmatpush3.bf16.msra.mxu0 %v256_v27  ;;  %275 = vmatpush3.bf16.msra.mxu1 %v256_v27 }
  0x24   :  { %223 = vmatmul.mubr.f32.vlgmr.msra.gmra.mrb[0].mxu0 %v27_v30  ;;  %226 = vmatmul.mubr.f32.vlgmr.msra.gmra.mrb[0].mxu1 %v29_v31 }
  0xf7   :  { %v224_v33 = vpop.f32.mrb[0].mxu0  ;;  %v227_v34 = vpop.f32.mrb[0].mxu1 }
  0xf8   :  { %v158_v35 = vadd.f32 %v224_v33, %v169_v32  ;;  %v160_v36 = vadd.f32 %v227_v34, %v169_v32  ;;  %v116_v37 = vpop.f32.mrb[1].mxu0  ;;  %v126_v38 = vpop.f32.mrb[1].mxu1 }
  0xf9   :  { %v157_v39 = vadd.f32 %v169_v32, %v116_v37  ;;  %v159_v40 = vadd.f32 %v169_v32, %v126_v38 }
  0xfa   :  { %162 = vst [vmem:[%s374_s3 + $0x8] sm:$0xff] %v158_v35  ;;  %164 = vst [vmem:[%s374_s3 + $0x18] sm:$0xff] %v160_v36 }
  0xfb   :  { %161 = vst [vmem:[%s374_s3] sm:$0xff] %v157_v39  ;;  %163 = vst [vmem:[%s374_s3 + $0x10] sm:$0xff] %v159_v40 }

// kernel: dman_attention_forward.3
= control target key start
LH: loop header
LB: loop body
LE: loop exit
PB: predicated region body
PF: predicated region fallthrough
CT: control target
= control target key end

     0   :  { %s857_s12 = smov 0   ;;  %s859_s13 = smov 0   ;;  %s986_s0 = inlined_call_operand.vmem [shape: f32[32,128], index: 0, kind: input, shape index: {}]   ;;  %s987_s1 = inlined_call_operand.vmem [shape: f32[128,384], index: 1, kind: input, shape index: {}]   ;;  %s988_s2 = inlined_call_operand.vmem [shape: f32[1,384], index: 2, kind: input, shape index: {}]   ;;  %s989_s3 = inlined_call_operand.vmem [shape: f32[32,384], index: 3, kind: output, shape index: {}]  }
   0x1   :  { %s861_s14 = smov 0   ;;  %s863_s15 = smov 0  }
   0x2   :  { %s865_s16 = smov 0  }
   0x3 LB: > { %s28_s17 = sadd.s32 1, %s831_s15  ;;  %s636_s18 = sadd.s32 4294967295, %s835_s16   ;;  %s835_s16 = sphi %s865_s16, %s13_s16   ;;  %s831_s15 = sphi %s863_s15, %s994_s15   ;;  %s827_s14 = sphi %s861_s14, %s993_s14   ;;  %s823_s13 = sphi %s859_s13, %s992_s13   ;;  %s819_s12 = sphi %s857_s12, %s991_s12  }
   0x4   : > { %p30_p0 = scmp.ge.s32.totalorder %s28_s17, 3  ;;  %p76_p1 = scmp.ne.s32.totalorder %s823_s13, %s819_s12 }
   0x5   : > { %p77_p2 = scmp.eq.s32.totalorder %s835_s16, 0  ;;  %p134_p4 = scmp.eq.s32.totalorder %s636_s18, 2 }
   0x6   : > { %s996_s17 = smov (%p30_p0, %s28_s17), 0  ;;  %s69_s20 = sadd.s32 1, %s823_s13 }
   0x7   : > { %p78_p3 = por %p77_p2, %p76_p1  ;;  %s65_s19 = ssub.s32 %s831_s15, %s996_s17 }
   0x8   : > { %p67_p5 = scmp.eq.s32.totalorder %s65_s19, 0  ;;  %p892_p6 = por %p134_p4, %p76_p1 }
   0x9   : > { %p640_p7 = scmp.ge.s32.totalorder %s835_s16, 3 }
   0xa   : > { %s897_s22 = scalar_select %p67_p5, %s823_s13, %s69_s20  }
   0xb   : > { %168 = sbr.rel (%p640_p7) target bundleno = 30 (0x1e), region = 20 }
  0x12   : > { %171 = sbr.rel (!%p78_p3) target bundleno = 30 (0x1e), region = 24  ;;  %s173_s23 = sand.u32 (%p78_p3), 1, %s823_s13  }
  0x13   : > { %s642_s24 = sshll.u32 (%p78_p3), %s831_s15, 3  ;;  %s641_s25 = sshll.u32 (%p78_p3), %s173_s23, 7 }
  0x14   : > { %s905_s28 = scalar_lea.vmem (%p78_p3), %s987_s1, %s642_s24  ;;  %s175_s29 = scalar_lea.vmem (%p78_p3), [#allocation3], %s641_s25 }
  0x15   : > { %v238_v0 = vld [vmem:[%s905_s28] sm:$0xff] (%p78_p3)  ;;  %v240_v1 = vld [vmem:[%s905_s28 + $0x18] sm:$0xff] (%p78_p3)  ;;  %v242_v2 = vld [vmem:[%s905_s28 + $0x30] sm:$0xff] (%p78_p3) }
  0x16   : > { %239 = vst [vmem:[%s175_s29] sm:$0xff] (%p78_p3), %v238_v0  ;;  %241 = vst [vmem:[%s175_s29 + $0x8] sm:$0xff] (%p78_p3), %v240_v1  ;;  %v244_v3 = vld [vmem:[%s905_s28 + $0x48] sm:$0xff] (%p78_p3)  ;;  %v246_v4 = vld [vmem:[%s905_s28 + $0x60] sm:$0xff] (%p78_p3) }
  0x17   : > { %243 = vst [vmem:[%s175_s29 + $0x10] sm:$0xff] (%p78_p3), %v242_v2  ;;  %v248_v5 = vld [vmem:[%s905_s28 + $0x78] sm:$0xff] (%p78_p3)  ;;  %245 = vst [vmem:[%s175_s29 + $0x18] sm:$0xff] (%p78_p3), %v244_v3  ;;  %v250_v6 = vld [vmem:[%s905_s28 + $0x90] sm:$0xff] (%p78_p3) }
  0x18   : > { %247 = vst [vmem:[%s175_s29 + $0x20] sm:$0xff] (%p78_p3), %v246_v4  ;;  %249 = vst [vmem:[%s175_s29 + $0x28] sm:$0xff] (%p78_p3), %v248_v5  ;;  %v252_v7 = vld [vmem:[%s905_s28 + $0xa8] sm:$0xff] (%p78_p3)  ;;  %v254_v8 = vld [vmem:[%s905_s28 + $0xc0] sm:$0xff] (%p78_p3) }
  0x19   : > { %251 = vst [vmem:[%s175_s29 + $0x30] sm:$0xff] %v250_v6  ;;  %253 = vst [vmem:[%s175_s29 + $0x38] sm:$0xff] %v252_v7  ;;  %v256_v9 = vld [vmem:[%s905_s28 + $0xd8] sm:$0xff]  ;;  %v258_v10 = vld [vmem:[%s905_s28 + $0xf0] sm:$0xff] }
  0x1a   : > { %255 = vst [vmem:[%s175_s29 + $0x40] sm:$0xff] %v254_v8  ;;  %v260_v11 = vld [vmem:[%s905_s28 + $0x108] sm:$0xff]  ;;  %257 = vst [vmem:[%s175_s29 + $0x48] sm:$0xff] %v256_v9  ;;  %v262_v12 = vld [vmem:[%s905_s28 + $0x120] sm:$0xff] }
  0x1b   : > { %259 = vst [vmem:[%s175_s29 + $0x50] sm:$0xff] %v258_v10  ;;  %261 = vst [vmem:[%s175_s29 + $0x58] sm:$0xff] %v260_v11  ;;  %v264_v13 = vld [vmem:[%s905_s28 + $0x138] sm:$0xff]  ;;  %v266_v14 = vld [vmem:[%s905_s28 + $0x150] sm:$0xff] }
  0x1c   : > { %263 = vst [vmem:[%s175_s29 + $0x60] sm:$0xff] %v262_v12  ;;  %265 = vst [vmem:[%s175_s29 + $0x68] sm:$0xff] %v264_v13  ;;  %v268_v15 = vld [vmem:[%s905_s28 + $0x168] sm:$0xff] }
  0x1d   : > { %267 = vst [vmem:[%s175_s29 + $0x70] sm:$0xff] %v266_v14  ;;  %269 = vst [vmem:[%s175_s29 + $0x78] sm:$0xff] %v268_v15 }
  0x1e PF: > { %p643_p8 = scmp.ge.s32.totalorder %s835_s16, 1  ;;  %p280_p9 = scmp.lt.s32.totalorder %s835_s16, 4 }
  0x20   : > { %p281_p10 = pnand %p643_p8, %p280_p9 }
  0x21   : > { %s287_s30 = sand.u32 (!%p281_p10), 1, %s819_s12   ;;  %v342_v16 = vld [vmem:[%s986_s0] sm:$0xff] (!%p281_p10)  ;;  %v344_v17 = vld [vmem:[%s986_s0 + $0x10] sm:$0xff] (!%p281_p10)  ;;  %v343_v42 = vld [vmem:[%s986_s0 + $0x8] sm:$0xff] (!%p281_p10)  ;;  %p330_p11 = scmp.lt.s32.totalorder (!%p281_p10), %s827_s14, 2 }
  0x22   : > { %284 = sbr.rel (%p281_p10) target bundleno = 295 (0x127), region = 66  ;;  %s644_s8 = sshll.u32 (!%p281_p10), %s287_s30, 7  ;;  %703 = vmatprep.mubr.f32.mxu0 (!%p281_p10), %v342_v16  ;;  %706 = vmatprep.mubr.f32.mxu1 (!%p281_p10), %v344_v17  ;;  %v345_v43 = vld [vmem:[%s986_s0 + $0x18] sm:$0xff] (!%p281_p10) }
  0x23   : > { %s934_s9 = scalar_lea.vmem (!%p281_p10), [#allocation3], %s644_s8  ;;  %s645_s26 = sshll.u32 (!%p281_p10), %s287_s30, 5 }
  0x24   : > { %v350_v18 = vld [vmem:[%s934_s9] sm:$0xff] (!%p281_p10)  ;;  %v351_v19 = vld [vmem:[%s934_s9 + $0x8] sm:$0xff] (!%p281_p10)  ;;  %v352_v20 = vld [vmem:[%s934_s9 + $0x10] sm:$0xff] (!%p281_p10)  ;;  %s319_s27 = scalar_lea.vmem (!%p281_p10), [#allocation4], %s645_s26 }
  0x25   : > { %v709_v21 = vpack.c.bf16 (!%p281_p10), %v351_v19, %v350_v18  ;;  %v353_v22 = vld [vmem:[%s934_s9 + $0x18] sm:$0xff] (!%p281_p10)  ;;  %v354_v24 = vld [vmem:[%s934_s9 + $0x20] sm:$0xff] (!%p281_p10)  ;;  %v355_v25 = vld [vmem:[%s934_s9 + $0x28] sm:$0xff] (!%p281_p10) }
  0x26   : > { %v713_v23 = vpack.c.bf16 (!%p281_p10), %v353_v22, %v352_v20  ;;  %v717_v26 = vpack.c.bf16 (!%p281_p10), %v355_v25, %v354_v24  ;;  %v356_v27 = vld [vmem:[%s934_s9 + $0x30] sm:$0xff] (!%p281_p10)  ;;  %v357_v28 = vld [vmem:[%s934_s9 + $0x38] sm:$0xff] (!%p281_p10)  ;;  %v358_v30 = vld [vmem:[%s934_s9 + $0x40] sm:$0xff] (!%p281_p10) }
  0x27   : > { %710 = vmatprep.subr.bf16.mxu0 (!%p281_p10), %v709_v21  ;;  %741 = vmatprep.subr.bf16.mxu1 (!%p281_p10), %v709_v21  ;;  %v721_v29 = vpack.c.bf16 (!%p281_p10), %v357_v28, %v356_v27  ;;  %v359_v31 = vld [vmem:[%s934_s9 + $0x48] sm:$0xff] (!%p281_p10)  ;;  %v360_v33 = vld [vmem:[%s934_s9 + $0x50] sm:$0xff] (!%p281_p10)  ;;  %v361_v34 = vld [vmem:[%s934_s9 + $0x58] sm:$0xff] (!%p281_p10) }
  0x28   : > { %712 = vmatpush3.bf16.msra.mxu0 (!%p281_p10), %v709_v21  ;;  %749 = vmatpush3.bf16.msra.mxu1 (!%p281_p10), %v709_v21  ;;  %v725_v32 = vpack.c.bf16 (!%p281_p10), %v359_v31, %v358_v30  ;;  %v729_v35 = vpack.c.bf16 (!%p281_p10), %v361_v34, %v360_v33  ;;  %v362_v36 = vld [vmem:[%s934_s9 + $0x60] sm:$0xff] (!%p281_p10)  ;;  %v363_v37 = vld [vmem:[%s934_s9 + $0x68] sm:$0xff] (!%p281_p10)  ;;  %v364_v39 = vld [vmem:[%s934_s9 + $0x70] sm:$0xff] (!%p281_p10) }
  0x29   : > { %714 = vmatprep.subr.bf16.mxu0 %v713_v23  ;;  %742 = vmatprep.subr.bf16.mxu1 %v713_v23  ;;  %v733_v38 = vpack.c.bf16 %v363_v37, %v362_v36  ;;  %v365_v40 = vld [vmem:[%s934_s9 + $0x78] sm:$0xff]  ;;  %s331_s20 = scalar_select %p330_p11, %s827_s14, 2 }
  0x2a   : > { %v737_v41 = vpack.c.bf16 %v365_v40, %v364_v39  ;;  %s648_s12 = sshll.u32 (%p892_p6), %s827_s14, 3 }
  0x2b   : > { %s332_s25 = scalar_lea.vmem %s988_s2, %s331_s20  ;;  %s492_s30 = scalar_lea.vmem (%p892_p6), %s989_s3, %s648_s12 }
  0x2c   : > { %716 = vmatpush3.bf16.msra.mxu0 %v713_v23  ;;  %750 = vmatpush3.bf16.msra.mxu1 %v713_v23  ;;  %v646_v44 = vld [vmem:[%s332_s25] ss:$0 sm:$0xff] }
  0x2d   : > { %718 = vmatprep.subr.bf16.mxu0 %v717_v26  ;;  %743 = vmatprep.subr.bf16.mxu1 %v717_v26 }
  0x30   : > { %720 = vmatpush3.bf16.msra.mxu0 %v717_v26  ;;  %751 = vmatpush3.bf16.msra.mxu1 %v717_v26 }
  0x31   : > { %722 = vmatprep.subr.bf16.mxu0 %v721_v29  ;;  %744 = vmatprep.subr.bf16.mxu1 %v721_v29 }
  0x34   : > { %724 = vmatpush3.bf16.msra.mxu0 %v721_v29  ;;  %752 = vmatpush3.bf16.msra.mxu1 %v721_v29 }
  0x35   : > { %726 = vmatprep.subr.bf16.mxu0 %v725_v32  ;;  %745 = vmatprep.subr.bf16.mxu1 %v725_v32 }
  0x38   : > { %728 = vmatpush3.bf16.msra.mxu0 %v725_v32  ;;  %753 = vmatpush3.bf16.msra.mxu1 %v725_v32 }
  0x39   : > { %730 = vmatprep.subr.bf16.mxu0 %v729_v35  ;;  %746 = vmatprep.subr.bf16.mxu1 %v729_v35 }
  0x3c   : > { %732 = vmatpush3.bf16.msra.mxu0 %v729_v35  ;;  %754 = vmatpush3.bf16.msra.mxu1 %v729_v35 }
  0x3d   : > { %734 = vmatprep.subr.bf16.mxu0 %v733_v38  ;;  %747 = vmatprep.subr.bf16.mxu1 %v733_v38 }
  0x40   : > { %736 = vmatpush3.bf16.msra.mxu0 %v733_v38  ;;  %755 = vmatpush3.bf16.msra.mxu1 %v733_v38 }
  0x41   : > { %738 = vmatprep.subr.bf16.mxu0 %v737_v41  ;;  %748 = vmatprep.subr.bf16.mxu1 %v737_v41 }
  0x44   : > { %740 = vmatpush3.bf16.msra.mxu0 %v737_v41  ;;  %756 = vmatpush3.bf16.msra.mxu1 %v737_v41 }
  0x47   : > { %704 = vmatmul.mubr.f32.vlgmr.msra.gmra.mrb[0].mxu0 %v343_v42  ;;  %707 = vmatmul.mubr.f32.vlgmr.msra.gmra.mrb[0].mxu1 %v345_v43 }
 0x118   : > { %487 = sbr.rel (!%p892_p6) target bundleno = 295 (0x127), region = 82 }
 0x11a   : > { %v705_v45 = vpop.f32.mrb[0].mxu0  ;;  %v708_v46 = vpop.f32.mrb[0].mxu1 }
 0x11b   : > { %v474_v47 = vadd.f32 %v705_v45, %v646_v44  ;;  %v476_v48 = vadd.f32 %v708_v46, %v646_v44  ;;  %v432_v49 = vpop.f32.mrb[1].mxu0  ;;  %v442_v50 = vpop.f32.mrb[1].mxu1 }
 0x11c   : > { %v473_v51 = vadd.f32 %v646_v44, %v432_v49  ;;  %v475_v52 = vadd.f32 %v646_v44, %v442_v50 }
 0x11d   : > { %478 = vst [vmem:[%s319_s27 + $0x8] sm:$0xff] %v474_v47  ;;  %480 = vst [vmem:[%s319_s27 + $0x18] sm:$0xff] %v476_v48 }
 0x11e   : > { %477 = vst [vmem:[%s319_s27] sm:$0xff] %v473_v51  ;;  %479 = vst [vmem:[%s319_s27 + $0x10] sm:$0xff] %v475_v52 }
 0x124   : > { %v528_v54 = vld [vmem:[%s319_s27 + $0x8] sm:$0xff]  ;;  %v532_v56 = vld [vmem:[%s319_s27 + $0x18] sm:$0xff] }
 0x125   : > { %v526_v53 = vld [vmem:[%s319_s27] sm:$0xff]  ;;  %v530_v55 = vld [vmem:[%s319_s27 + $0x10] sm:$0xff]  ;;  %529 = vst [vmem:[%s492_s30 + $0x18] sm:$0xff] %v528_v54  ;;  %533 = vst [vmem:[%s492_s30 + $0x48] sm:$0xff] %v532_v56 }
 0x126   : > { %527 = vst [vmem:[%s492_s30] sm:$0xff] %v526_v53  ;;  %531 = vst [vmem:[%s492_s30 + $0x30] sm:$0xff] %v530_v55 }
 0x127 PF: > { %s13_s16 = sadd.s32 1, %s835_s16   ;;  %s991_s12 = smov %s823_s13 }
 0x128   : > { %p10_p12 = scmp.ge.s32.totalorder %s13_s16, 5   ;;  %s992_s13 = smov %s897_s22 }
 0x129   : > { %s993_s14 = smov %s831_s15  ;;  %s994_s15 = smov %s996_s17 }
 0x12a   :  { %12 = sbr.rel (!%p10_p12) target bundleno = 3 (0x3), region = 157 }

// kernel: dman_attention_forward.4
= control target key start
LH: loop header
LB: loop body
LE: loop exit
PB: predicated region body
PF: predicated region fallthrough
CT: control target
= control target key end

     0   :  { %10 = vsyncpa [#allocation6], 0  ;;  %s2119_s0 = inlined_call_operand.vmem [shape: f32[2,16,384], index: 0, kind: input, shape index: {}, may-alias: {0,1,2}]   ;;  %s2120_s1 = inlined_call_operand.vmem [shape: f32[2,16,384], index: 1, kind: input, shape index: {}, may-alias: {0,1,2}]   ;;  %s2121_s2 = inlined_call_operand.vmem [shape: f32[2,16,384], index: 2, kind: input, shape index: {}, may-alias: {0,1,2}]   ;;  %s2122_s3 = inlined_call_operand.vmem [shape: f32[2,16,128], index: 3, kind: output, shape index: {0}]   ;;  %s2123_s4 = inlined_call_operand.hbm [shape: f32[2,16,16], index: 4, kind: output, shape index: {1}]  }
   0x1   :  { %12 = vsyncpa [#allocation6 + $0x1], 0  ;;  %s1846_s15 = smov 0   ;;  %s1848_s16 = smov 0  }
   0x2   :  { %s1850_s17 = smov 0   ;;  %s1852_s18 = smov 0  }
   0x3   :  { %s1854_s19 = smov 0   ;;  %s1856_s20 = smov 0  }
   0x4 LB: > { %s1432_s21 = sadd.s32 4294967295, %s1813_s20   ;;  %s1433_s22 = sadd.s32 4294967294, %s1813_s20   ;;  %s1813_s20 = sphi %s1856_s20, %s18_s20   ;;  %s1809_s19 = sphi %s1854_s19, %s2133_s19   ;;  %s1805_s18 = sphi %s1852_s18, %s2132_s18   ;;  %s1801_s17 = sphi %s1850_s17, %s2131_s17   ;;  %s1797_s16 = sphi %s1848_s16, %s2130_s16   ;;  %s1793_s15 = sphi %s1846_s15, %s2129_s15  }
   0x5   : > { %s30_s23 = sadd.s32 1, %s1809_s19  ;;  %s39_s24 = sadd.s32 1, %s1801_s17 }
   0x6   : > { %p32_p0 = scmp.ge.s32.totalorder %s30_s23, 2  ;;  %p46_p1 = scmp.ne.s32.totalorder %s1801_s17, %s1797_s16 }
   0x7   : > { %p47_p2 = scmp.eq.s32.totalorder %s1813_s20, 0  ;;  %p158_p3 = scmp.eq.s32.totalorder %s1432_s21, 1 }
   0x8   : > { %s2135_s23 = smov (%p32_p0, %s30_s23), 0  ;;  %p163_p6 = scmp.ne.s32.totalorder %s1797_s16, %s1793_s15 }
   0x9   : > { %p1885_p4 = por %p47_p2, %p46_p1  ;;  %p1889_p5 = por %p158_p3, %p46_p1 }
   0xa   : > { %s34_s27 = ssub.s32 %s1809_s19, %s2135_s23  ;;  %p164_p8 = scmp.eq.s32.totalorder %s1433_s22, 1 }
   0xb   : > { %p37_p7 = scmp.eq.s32.totalorder %s34_s27, 0  ;;  %p1435_p10 = scmp.ge.s32.totalorder %s1813_s20, 2 }
   0xc   : > { %p1900_p9 = por %p164_p8, %p163_p6 }
   0xd   : > { %s1898_s28 = scalar_select %p37_p7, %s1801_s17, %s39_s24  }
   0xe   : > { %180 = sbr.rel (%p1435_p10) target bundleno = 42 (0x2a), region = 16 }
  0x15   : > { %183 = sbr.rel (!%p1885_p4) target bundleno = 28 (0x1c), region = 20  ;;  %s185_s30 = sand.u32 (%p1885_p4), 1, %s1801_s17  }
  0x16   : > { %s1612_s5 = smul.u32 (%p1885_p4), 48, %s1809_s19  ;;  %s1436_s6 = sshll.u32 (%p1885_p4), %s185_s30, 4 }
  0x17   : > { %s187_s10 = scalar_lea.vmem (%p1885_p4), [#allocation2], %s1436_s6 }
  0x18   : > { %s193_s9 = scalar_lea.vmem (%p1885_p4), %s2119_s0, %s1612_s5 }
  0x19   : > { %v223_v0 = vld [vmem:[%s193_s9] sm:$0xff] (%p1885_p4)  ;;  %v225_v1 = vld [vmem:[%s193_s9 + $0x18] sm:$0xff] (%p1885_p4) }
  0x1a   : > { %224 = vst [vmem:[%s187_s10] sm:$0xff] (%p1885_p4), %v223_v0  ;;  %226 = vst [vmem:[%s187_s10 + $0x8] sm:$0xff] (%p1885_p4), %v225_v1 }
  0x1c PF: > { %232 = sbr.rel (!%p1885_p4) target bundleno = 35 (0x23), region = 58  ;;  %s234_s11 = sand.u32 (%p1885_p4), 1, %s1801_s17  }
  0x1d   : > { %s1439_s12 = smul.u32 (%p1885_p4), 48, %s1809_s19  ;;  %s1438_s13 = sshll.u32 (%p1885_p4), %s234_s11, 4 }
  0x1e   : > { %s236_s24 = scalar_lea.vmem (%p1885_p4), [#allocation3], %s1438_s13 }
  0x1f   : > { %s1320_s22 = scalar_lea.vmem (%p1885_p4), %s2120_s1, %s1439_s12 }
  0x20   : > { %v1440_v2 = vld [vmem:[%s1320_s22 + $0x8] sm:$0xff] (%p1885_p4)  ;;  %v1441_v3 = vld [vmem:[%s1320_s22 + $0x20] sm:$0xff] (%p1885_p4) }
  0x21   : > { %271 = vst [vmem:[%s236_s24] sm:$0xff] (%p1885_p4), %v1440_v2  ;;  %273 = vst [vmem:[%s236_s24 + $0x8] sm:$0xff] (%p1885_p4), %v1441_v3 }
  0x23 PF: > { %279 = sbr.rel (!%p1885_p4) target bundleno = 42 (0x2a), region = 96  ;;  %s281_s27 = sand.u32 (%p1885_p4), 1, %s1801_s17  }
  0x24   : > { %s1443_s30 = smul.u32 (%p1885_p4), 48, %s1809_s19  ;;  %s1442_s5 = sshll.u32 (%p1885_p4), %s281_s27, 4 }
  0x25   : > { %s283_s9 = scalar_lea.vmem (%p1885_p4), [#allocation4], %s1442_s5 }
  0x26   : > { %s1326_s8 = scalar_lea.vmem (%p1885_p4), %s2121_s2, %s1443_s30 }
  0x27   : > { %v1444_v4 = vld [vmem:[%s1326_s8 + $0x10] sm:$0xff] (%p1885_p4)  ;;  %v1445_v5 = vld [vmem:[%s1326_s8 + $0x28] sm:$0xff] (%p1885_p4) }
  0x28   : > { %318 = vst [vmem:[%s283_s9] sm:$0xff] (%p1885_p4), %v1444_v4  ;;  %320 = vst [vmem:[%s283_s9 + $0x8] sm:$0xff] (%p1885_p4), %v1445_v5 }
  0x2a PF: > { %p1446_p11 = scmp.ge.s32.totalorder %s1813_s20, 1  ;;  %p325_p12 = scmp.lt.s32.totalorder %s1813_s20, 3 }
  0x2c   : > { %p326_p13 = pnand %p1446_p11, %p325_p12 }
  0x2d   : > { %s332_s25 = sand.u32 (!%p326_p13), 1, %s1797_s16   ;;  %vm406_vm0 = vcmask (!%p326_p13), 261120   ;;  %s1815_s13 = smov (!%p326_p13), 96   ;;  %vm494_vm2 = vcmask (!%p326_p13), 130048  }
  0x2e   : > { %329 = sbr.rel (%p326_p13) target bundleno = 2542 (0x9ee), region = 134  ;;  %s1933_s10 = sshll.u32 (!%p326_p13), %s332_s25, 4  ;;  %vm1937_vm1 = vmpackc.low (!%p326_p13), %vm406_vm0, %vm406_vm0 }
  0x2f   : > { %s341_s11 = scalar_lea.vmem (!%p326_p13), [#allocation3], %s1933_s10  ;;  %s334_s12 = scalar_lea.vmem (!%p326_p13), [#allocation2], %s1933_s10 }
  0x30   : > { %v402_v7 = vld [vmem:[%s341_s11] sm:$0xff] (!%p326_p13)  ;;  %v403_v8 = vld [vmem:[%s341_s11 + $0x8] sm:$0xff] (!%p326_p13)  ;;  %s348_s14 = scalar_lea.vmem (!%p326_p13), [#allocation4], %s1933_s10  ;;  %s1816_s21 = smov (!%p326_p13), 64  }
  0x31   : > { %v1943_v9 = vld [vmem:[%s334_s12] sm:$0xff] (!%p326_p13)  ;;  %v1572_v10 = vpack.c.bf16 (!%p326_p13), %v403_v8, %v402_v7  ;;  %v1951_v11 = vld [vmem:[%s334_s12 + $0x8] sm:$0xff] (!%p326_p13)  ;;  %v1959_v16 = vpack.i.bf16 (!%p326_p13), %v403_v8, %v402_v7  ;;  %s1817_s22 = smov (!%p326_p13), 32   ;;  %s387_s24 = scalar_lea.vmem (!%p326_p13), [#allocation5], %s1933_s10 }
  0x32   : > { %1520 = vmatprep.mubr.msk.f32.mxu0 (!%p326_p13), %vm406_vm0, %v1943_v9  ;;  %598 = vrot.lane.b32.xlu1 (!%p326_p13), %v1943_v9, %s1815_s13  ;;  %v404_v28 = vld [vmem:[%s348_s14] sm:$0xff] (!%p326_p13)  ;;  %v405_v29 = vld [vmem:[%s348_s14 + $0x8] sm:$0xff] (!%p326_p13)  ;;  %s1483_s27 = sshll.u32 (!%p326_p13), %s1805_s18, 8  ;;  %s1273_s30 = sshll.u32 (!%p326_p13), %s387_s24, 4  ;;  %s2057_s30 = int_to_ptr.vmem [resolvable:$true] %s1273_s30 }
  0x33   : > { %1574 = vmatprep.subr.msk.bf16.mxu0 (!%p326_p13), %vm1937_vm1, %v1572_v10  ;;  %v1578_v32 = vpack.c.bf16 (!%p326_p13), %v405_v29, %v404_v28  ;;  %v1988_v48 = vpack.i.bf16 (!%p326_p13), %v405_v29, %v404_v28  ;;  %s2055_s7 = scalar_lea.hbm (!%p326_p13), %s2123_s4, %s1483_s27  ;;  %s2061_s8 = scalar_lea.sflag (!%p326_p13), [#allocation6], %s332_s25 }
  0x34   : > { %1577 = vmatpush3.bf16.xpose.msk.msra.mxu0 (!%p326_p13), %vm1937_vm1, %v1572_v10  ;;  %s1735_s9 = scalar_lea.vmem (!%p326_p13), %s2057_s30, 256  ;;  %s1818_s10 = smov (!%p326_p13), [#allocation5]  }
  0x35   : > { %1579 = vmatprep.subr.bf16.mxu1 %v1578_v32  ;;  %p1736_p0 = scmp.ne.s32.totalorder %s2057_s30, %s1735_s9  ;;  %s1739_s11 = sshll.u32 %s1818_s10, 4  ;;  %s1740_s11 = int_to_ptr.vmem [resolvable:$false] %s1739_s11 }
  0x36   : > { %1581 = vmatpush3.bf16.msra.mxu1 %v1578_v32  ;;  %s1741_s12 = scalar_lea.vmem %s1740_s11, 512  ;;  %p1742_p3 = scmp.lt.s32.totalorder %s2057_s30, %s1740_s11 }
  0x37   : > { %p1737_p1 = pnand %p1736_p0, %p1889_p5  ;;  %p1743_p4 = scmp.lt.s32.totalorder %s1741_s12, %s1735_s9 }
  0x39   : > { %p1738_p2 = pneg %p1737_p1  ;;  %p1744_p6 = por %p1743_p4, %p1742_p3 }
  0x3b   : > { %1521 = vmatmul.mubr.msk.f32.vlgmr.msra.gmra.mrb[0].mxu0 %vm406_vm0, %v1951_v11  ;;  %p1745_p7 = pnand %p1744_p6, %p1738_p2 }
  0xa4   : > { %v599_v34 = vpop.permute.xlu1 %598 }
 0x10e   : > { %v1522_v12 = vpop.f32.mrb[0].mxu0 }
 0x10f   : > { %v485_v13 = vpop.f32.mrb[1].mxu0  ;;  %v498_v15 = vsel %vm494_vm2, %v1522_v12, -inf }
 0x110   : > { %v495_v14 = vsel %vm494_vm2, %v485_v13, -inf }
 0x111   : > { %496 = vmax.xlane.f32.xlu0 %v495_v14 }
 0x115   : > { %499 = vmax.xlane.f32.xlu0 %v498_v15 }
 0x12b   : > { %1674 = vrot.lane.b32.xlu0 %v1959_v16, %s1815_s13 }
 0x19e   : > { %v497_v17 = vpop.xlane.xlu0 %496 }
 0x19f   : > { %v501_v18 = vsub.f32 %v485_v13, %v497_v17 }
 0x1a1   : > { %v503_v21 = vmul.f32 1.442695, %v501_v18 }
 0x1a2   : > { %v500_v19 = vpop.xlane.xlu0 %499 }
 0x1a3   : > { %v502_v20 = vsub.f32 %v1522_v12, %v500_v19 }
 0x1a5   : > { %v505_v22 = vmul.f32 1.442695, %v502_v20 }
 0x1a6   : > { %v1675_v27 = vpop.permute.xlu0 %1674 }
 0x1a7   : > { %1703 = vpow2.f32 %v505_v22  ;;  %v1677_v30 = vunpack.i.h.bf16 %v1675_v27  ;;  %v1676_v31 = vunpack.i.l.bf16 %v1675_v27 }
 0x1a8   : > { %1705 = vpow2.f32 %v503_v21 }
 0x1a9   : > { %v1582_v33 = vpack.c.bf16 %v1677_v30, %v1676_v31 }
 0x1ab   : > { %1584 = vmatprep.subr.msk.bf16.mxu1 %vm1937_vm1, %v1582_v33 }
 0x1b1   : > { %v1704_v23 = vpop.eup %1703 }
 0x1b2   : > { %v510_v24 = vsel %vm494_vm2, %v1704_v23, 0.0  ;;  %v1706_v25 = vpop.eup %1705 }
 0x1b3   : > { %511 = vadd.xlane.f32.xlu1 %v510_v24  ;;  %v507_v26 = vsel %vm494_vm2, %v1706_v25, 0.0 }
 0x1b7   : > { %508 = vadd.xlane.f32.xlu1 %v507_v26 }
 0x1c8   : > { %600 = vrot.lane.b32.xlu1 %v1951_v11, %s1815_s13 }
 0x240   : > { %v512_v35 = vpop.xlane.xlu1 %511 }
 0x241   : > { %1707 = vrcp.f32 %v512_v35 }
 0x244   : > { %v509_v36 = vpop.xlane.xlu1 %508 }
 0x245   : > { %1709 = vrcp.f32 %v509_v36 }
 0x248   : > { %v601_v41 = vpop.permute.xlu1 %600 }
 0x24b   : > { %v1708_v37 = vpop.eup %1707 }
 0x24c   : > { %v1972_v40 = vmul.f32 %v1708_v37, %v1704_v23 }
 0x24f   : > { %v1710_v38 = vpop.eup %1709 }
 0x250   : > { %v1970_v39 = vmul.f32 %v1710_v38, %v1706_v25 }
 0x252   : > { %1527 = vmatprep.mubr.msk.f32.mxu1 %vm494_vm2, %v1970_v39 }
 0x253   : > { %1528 = vmatmul.mubr.msk.f32.vlgmr.msra.gmra.mrb[0].mxu1 %vm494_vm2, %v1972_v40 }
 0x254   : > { %1587 = vmatpush3.bf16.xpose.msk.msra.mxu1 %vm1937_vm1, %v1582_v33  ;;  %1534 = vmatprep.mubr.msk.f32.mxu1 %vm406_vm0, %v599_v34 }
 0x25b   : > { %1535 = vmatmul.mubr.msk.f32.vlgmr.msra.gmra.mrb[2].mxu1 %vm406_vm0, %v601_v41 }
 0x326   : > { %v1982_v42 = vpop.f32.mrb[0].mxu1 }
 0x327   : > { %v1984_v43 = vpop.f32.mrb[1].mxu1 }
 0x32e   : > { %v1536_v44 = vpop.f32.mrb[2].mxu1 }
 0x32f   : > { %v680_v45 = vpop.f32.mrb[3].mxu1  ;;  %v692_v46 = vsel %vm494_vm2, %v1536_v44, -inf }
 0x330   : > { %693 = vmax.xlane.f32.xlu0 %v692_v46  ;;  %v689_v47 = vsel %vm494_vm2, %v680_v45, -inf }
 0x331   : > { %690 = vmax.xlane.f32.xlu1 %v689_v47 }
 0x342   : > { %1679 = vrot.lane.b32.xlu1 %v1988_v48, %s1815_s13 }
 0x346   : > { %802 = vrot.lane.b32.xlu1 %v1943_v9, %s1816_s21 }
 0x34a   : > { %804 = vrot.lane.b32.xlu1 %v1951_v11, %s1816_s21 }
 0x3bd   : > { %v694_v49 = vpop.xlane.xlu0 %693 }
 0x3be   : > { %v696_v50 = vsub.f32 %v1536_v44, %v694_v49  ;;  %v691_v51 = vpop.xlane.xlu1 %690 }
 0x3bf   : > { %v695_v52 = vsub.f32 %v680_v45, %v691_v51 }
 0x3c0   : > { %v699_v53 = vmul.f32 1.442695, %v696_v50 }
 0x3c1   : > { %v697_v54 = vmul.f32 1.442695, %v695_v52 }
 0x3c2   : > { %1711 = vpow2.f32 %v699_v53  ;;  %v1680_v59 = vpop.permute.xlu1 %1679 }
 0x3c3   : > { %1713 = vpow2.f32 %v697_v54  ;;  %v1682_v60 = vunpack.i.h.bf16 %v1680_v59  ;;  %v1681_v61 = vunpack.i.l.bf16 %v1680_v59 }
 0x3c5   : > { %v1588_v62 = vpack.c.bf16 %v1682_v60, %v1681_v61 }
 0x3c6   : > { %v803_v12 = vpop.permute.xlu1 %802 }
 0x3c7   : > { %1589 = vmatprep.subr.bf16.mxu0 %v1588_v62 }
 0x3c8   : > { %1591 = vmatpush3.bf16.msra.mxu0 %v1588_v62 }
 0x3ca   : > { %v805_v13 = vpop.permute.xlu1 %804 }
 0x3cc   : > { %v1712_v55 = vpop.eup %1711 }
 0x3cd   : > { %v704_v56 = vsel %vm494_vm2, %v1712_v55, 0.0  ;;  %v1714_v57 = vpop.eup %1713 }
 0x3ce   : > { %705 = vadd.xlane.f32.xlu0 %v704_v56  ;;  %v701_v58 = vsel %vm494_vm2, %v1714_v57, 0.0 }
 0x3d2   : > { %702 = vadd.xlane.f32.xlu0 %v701_v58 }
 0x3e8   : > { %1684 = vrot.lane.b32.xlu0 %v1959_v16, %s1816_s21 }
 0x45b   : > { %v706_v63 = vpop.xlane.xlu0 %705 }
 0x45c   : > { %1715 = vrcp.f32 %v706_v63 }
 0x45f   : > { %v703_v0 = vpop.xlane.xlu0 %702 }
 0x460   : > { %1717 = vrcp.f32 %v703_v0 }
 0x463   : > { %v1685_v1 = vpop.permute.xlu0 %1684 }
 0x464   : > { %v1687_v2 = vunpack.i.h.bf16 %v1685_v1  ;;  %v1686_v3 = vunpack.i.l.bf16 %v1685_v1 }
 0x466   : > { %v1592_v4 = vpack.c.bf16 %v1687_v2, %v1686_v3  ;;  %v1716_v5 = vpop.eup %1715 }
 0x467   : > { %v710_v10 = vmul.f32 %v1716_v5, %v1712_v55 }
 0x468   : > { %1594 = vmatprep.subr.msk.bf16.mxu0 %vm1937_vm1, %v1592_v4 }
 0x469   : > { %v712_v44 = vadd.f32 %v710_v10, %v1972_v40 }
 0x46a   : > { %v1718_v7 = vpop.eup %1717 }
 0x46b   : > { %v709_v8 = vmul.f32 %v1718_v7, %v1714_v57 }
 0x46d   : > { %1541 = vmatprep.mubr.msk.f32.mxu0 %vm494_vm2, %v709_v8  ;;  %v711_v49 = vadd.f32 %v709_v8, %v1970_v39 }
 0x46e   : > { %1542 = vmatmul.mubr.msk.f32.vlgmr.msra.gmra.mrb[2].mxu0 %vm494_vm2, %v710_v10 }
 0x46f   : > { %1597 = vmatpush3.bf16.xpose.msk.msra.mxu0 %vm1937_vm1, %v1592_v4  ;;  %1548 = vmatprep.mubr.msk.f32.mxu0 %vm406_vm0, %v803_v12 }
 0x476   : > { %1549 = vmatmul.mubr.msk.f32.vlgmr.msra.gmra.mrb[4].mxu0 %vm406_vm0, %v805_v13 }
 0x541   : > { %v2008_v14 = vpop.f32.mrb[2].mxu0 }
 0x542   : > { %v2010_v15 = vpop.f32.mrb[3].mxu0 }
 0x549   : > { %v1550_v17 = vpop.f32.mrb[4].mxu0 }
 0x54a   : > { %v884_v18 = vpop.f32.mrb[5].mxu0  ;;  %v896_v19 = vsel %vm494_vm2, %v1550_v17, -inf }
 0x54b   : > { %897 = vmax.xlane.f32.xlu0 %v896_v19  ;;  %v893_v20 = vsel %vm494_vm2, %v884_v18, -inf }
 0x54c   : > { %894 = vmax.xlane.f32.xlu1 %v893_v20 }
 0x55d   : > { %1689 = vrot.lane.b32.xlu1 %v1988_v48, %s1816_s21 }
 0x561   : > { %1004 = vrot.lane.b32.xlu1 %v1943_v9, %s1817_s22 }
 0x565   : > { %1006 = vrot.lane.b32.xlu1 %v1951_v11, %s1817_s22 }
 0x5d8   : > { %v898_v21 = vpop.xlane.xlu0 %897 }
 0x5d9   : > { %v900_v22 = vsub.f32 %v1550_v17, %v898_v21  ;;  %v895_v23 = vpop.xlane.xlu1 %894 }
 0x5da   : > { %v899_v24 = vsub.f32 %v884_v18, %v895_v23 }
 0x5db   : > { %v903_v25 = vmul.f32 1.442695, %v900_v22 }
 0x5dc   : > { %v901_v26 = vmul.f32 1.442695, %v899_v24 }
 0x5dd   : > { %1719 = vpow2.f32 %v903_v25  ;;  %v1690_v9 = vpop.permute.xlu1 %1689 }
 0x5de   : > { %1721 = vpow2.f32 %v901_v26  ;;  %v1692_v31 = vunpack.i.h.bf16 %v1690_v9  ;;  %v1691_v32 = vunpack.i.l.bf16 %v1690_v9 }
 0x5e0   : > { %v1598_v11 = vpack.c.bf16 %v1692_v31, %v1691_v32 }
 0x5e1   : > { %v1005_v50 = vpop.permute.xlu1 %1004 }
 0x5e2   : > { %1599 = vmatprep.subr.bf16.mxu1 %v1598_v11 }
 0x5e3   : > { %1601 = vmatpush3.bf16.msra.mxu1 %v1598_v11 }
 0x5e5   : > { %v1007_v40 = vpop.permute.xlu1 %1006 }
 0x5e7   : > { %v1720_v27 = vpop.eup %1719 }
 0x5e8   : > { %v908_v28 = vsel %vm494_vm2, %v1720_v27, 0.0  ;;  %v1722_v29 = vpop.eup %1721 }
 0x5e9   : > { %909 = vadd.xlane.f32.xlu0 %v908_v28  ;;  %v905_v30 = vsel %vm494_vm2, %v1722_v29, 0.0 }
 0x5ed   : > { %906 = vadd.xlane.f32.xlu0 %v905_v30 }
 0x603   : > { %1694 = vrot.lane.b32.xlu0 %v1959_v16, %s1817_s22 }
 0x676   : > { %v910_v33 = vpop.xlane.xlu0 %909 }
 0x677   : > { %1723 = vrcp.f32 %v910_v33 }
 0x67a   : > { %v907_v34 = vpop.xlane.xlu0 %906 }
 0x67b   : > { %1725 = vrcp.f32 %v907_v34 }
 0x67e   : > { %v1695_v35 = vpop.permute.xlu0 %1694 }
 0x67f   : > { %v1697_v36 = vunpack.i.h.bf16 %v1695_v35  ;;  %v1696_v37 = vunpack.i.l.bf16 %v1695_v35 }
 0x681   : > { %v1724_v38 = vpop.eup %1723  ;;  %v1602_v41 = vpack.c.bf16 %v1697_v36, %v1696_v37 }
 0x682   : > { %v914_v45 = vmul.f32 %v1724_v38, %v1720_v27 }
 0x683   : > { %1604 = vmatprep.subr.msk.bf16.mxu1 %vm1937_vm1, %v1602_v41 }
 0x684   : > { %v916_v46 = vadd.f32 %v914_v45, %v712_v44 }
 0x685   : > { %v1726_v47 = vpop.eup %1725 }
 0x686   : > { %v913_v16 = vmul.f32 %v1726_v47, %v1722_v29 }
 0x688   : > { %v915_v51 = vadd.f32 %v913_v16, %v711_v49  ;;  %1555 = vmatprep.mubr.msk.f32.mxu1 %vm494_vm2, %v913_v16 }
 0x689   : > { %1556 = vmatmul.mubr.msk.f32.vlgmr.msra.gmra.mrb[4].mxu1 %vm494_vm2, %v914_v45 }
 0x68a   : > { %1607 = vmatpush3.bf16.xpose.msk.msra.mxu1 %vm1937_vm1, %v1602_v41  ;;  %1562 = vmatprep.mubr.msk.f32.mxu1 %vm406_vm0, %v1005_v50 }
 0x691   : > { %1563 = vmatmul.mubr.msk.f32.vlgmr.msra.gmra.mrb[6].mxu1 %vm406_vm0, %v1007_v40 }
 0x75c   : > { %v1557_v52 = vpop.f32.mrb[4].mxu1 }
 0x75d   : > { %v995_v53 = vpop.f32.mrb[5].mxu1 }
 0x764   : > { %v1564_v54 = vpop.f32.mrb[6].mxu1 }
 0x765   : > { %v1086_v55 = vpop.f32.mrb[7].mxu1  ;;  %v1098_v39 = vsel %vm494_vm2, %v1564_v54, -inf }
 0x766   : > { %1099 = vmax.xlane.f32.xlu0 %v1098_v39  ;;  %v1095_v56 = vsel %vm494_vm2, %v1086_v55, -inf }
 0x767   : > { %1096 = vmax.xlane.f32.xlu1 %v1095_v56 }
 0x778   : > { %1699 = vrot.lane.b32.xlu1 %v1988_v48, %s1817_s22 }
 0x77c   : > { %1210 = vrot.lane.b32.xlu1 %v2008_v14, %s1817_s22 }
 0x780   : > { %1216 = vrot.lane.b32.xlu1 %v995_v53, %s1816_s21 }
 0x784   : > { %1218 = vrot.lane.b32.xlu1 %v1557_v52, %s1816_s21 }
 0x7f3   : > { %v1100_v6 = vpop.xlane.xlu0 %1099 }
 0x7f4   : > { %v1102_v57 = vsub.f32 %v1564_v54, %v1100_v6  ;;  %v1097_v58 = vpop.xlane.xlu1 %1096 }
 0x7f5   : > { %v1101_v59 = vsub.f32 %v1086_v55, %v1097_v58 }
 0x7f6   : > { %v1105_v60 = vmul.f32 1.442695, %v1102_v57 }
 0x7f7   : > { %v1103_v61 = vmul.f32 1.442695, %v1101_v59 }
 0x7f8   : > { %v1700_v62 = vpop.permute.xlu1 %1699 }
 0x7f9   : > { %1727 = vpow2.f32 %v1103_v61  ;;  %v1702_v63 = vunpack.i.h.bf16 %v1700_v62  ;;  %v1701_v0 = vunpack.i.l.bf16 %v1700_v62 }
 0x7fa   : > { %1729 = vpow2.f32 %v1105_v60 }
 0x7fb   : > { %v1608_v1 = vpack.c.bf16 %v1702_v63, %v1701_v0 }
 0x7fd   : > { %1609 = vmatprep.subr.bf16.mxu0 %v1608_v1 }
 0x7fe   : > { %1611 = vmatpush3.bf16.msra.mxu0 %v1608_v1 }
 0x803   : > { %v1728_v48 = vpop.eup %1727 }
 0x804   : > { %v1107_v2 = vsel %vm494_vm2, %v1728_v48, 0.0  ;;  %v1730_v3 = vpop.eup %1729 }
 0x805   : > { %1108 = vadd.xlane.f32.xlu0 %v1107_v2  ;;  %v1110_v4 = vsel %vm494_vm2, %v1730_v3, 0.0 }
 0x809   : > { %1111 = vadd.xlane.f32.xlu0 %v1110_v4 }
 0x81f   : > { %1208 = vrot.lane.b32.xlu0 %v2010_v15, %s1817_s22 }
 0x892   : > { %v1109_v5 = vpop.xlane.xlu0 %1108 }
 0x893   : > { %1731 = vrcp.f32 %v1109_v5 }
 0x896   : > { %v1112_v7 = vpop.xlane.xlu0 %1111 }
 0x897   : > { %1733 = vrcp.f32 %v1112_v7 }
 0x89d   : > { %v1732_v8 = vpop.eup %1731 }
 0x89e   : > { %v1115_v10 = vmul.f32 %v1732_v8, %v1728_v48 }
 0x8a0   : > { %v1117_v12 = vadd.f32 %v1115_v10, %v915_v51  ;;  %1569 = vmatprep.mubr.msk.f32.mxu0 %vm494_vm2, %v1115_v10 }
 0x8a1   : > { %v1734_v13 = vpop.eup %1733 }
 0x8a2   : > { %v1116_v14 = vmul.f32 %v1734_v13, %v1730_v3  ;;  %v1240_v17 = vmul.f32 0.25, %v1117_v12 }
 0x8a4   : > { %v1118_v18 = vadd.f32 %v1116_v14, %v916_v46  ;;  %1570 = vmatmul.mubr.msk.f32.vlgmr.msra.gmra.mrb[6].mxu0 %vm494_vm2, %v1116_v14  ;;  %1242 = vst.msk [vmem:[%s387_s24] sm:$0xff] %vm494_vm2, %v1240_v17 }
 0x8a6   : > { %v1241_v15 = vmul.f32 0.25, %v1118_v18 }
 0x8a8   : > { %1243 = vst.msk [vmem:[%s387_s24 + $0x8] sm:$0xff] %vm494_vm2, %v1241_v15 }
 0x8a9   : > { %1748 = shalt.err (!%p1745_p7)
}
 0x8aa   : > { %s1749_s25 = scalar_lea.hbm %s2055_s7, 256  ;;  %s1753_s22 = scalar_lea.hbm %s2123_s4, 512 }
 0x8ab   : > { %p1750_p8 = scmp.ne.s32.totalorder %s2055_s7, %s1749_s25  ;;  %p1754_p13 = scmp.lt.u32.totalorder %s2055_s7, %s2123_s4 }
 0x8ac   : > { %p1755_p0 = scmp.lt.u32.totalorder %s1753_s22, %s1749_s25  ;;  %p1757_p2 = scmp.lt.u32.totalorder %s1749_s25, %s2055_s7 }
 0x8ad   : > { %p1751_p11 = pnand %p1750_p8, %p1889_p5 }
 0x8ae   : > { %p1756_p1 = por %p1755_p0, %p1754_p13 }
 0x8af   : > { %p1752_p12 = pneg %p1751_p11 }
 0x8b0   : > { %p1758_p3 = por %p1757_p2, %p1756_p1 }
 0x8b2   : > { %p1759_p4 = pnand %p1758_p3, %p1752_p12 }
 0x8b4   : > { %1762 = shalt.err (!%p1759_p4)
}
 0x8b5   : > { %s1819_s5 = smov 128   ;;  %s1820_s6 = smov 8   ;;  %v1211_v21 = vpop.permute.xlu1 %1210  ;;  %v1209_v23 = vpop.permute.xlu0 %1208  ;;  %vm1232_vm3 = vcmask 523264   ;;  %vm1235_vm4 = vcmask 785408  }
 0x8b6   : > { %1613 = dma.vmem_to_hbm [thread:$0]  (%p1889_p5), %s2057_s30, 256, %s2055_s7, %s2061_s8, %s1819_s5, %s1819_s5, %s1820_s6   ;;  %v1230_v25 = vsel %vm406_vm0, %v1984_v43, %v1209_v23  ;;  %v1231_v26 = vsel %vm406_vm0, %v1982_v42, %v1211_v21 }
 0x8b7   : > { %p390_p6 = scmp.lt.s32.totalorder %s1805_s18, 1 }
 0x8b9   : > { %v1217_v22 = vpop.permute.xlu1 %1216  ;;  %s2137_s18 = smov (!%p390_p6, %s1805_s18), 1 }
 0x8ba   : > { %s1482_s9 = sshll.u32 %s2137_s18, 4  ;;  %v1233_v30 = vsel %vm1232_vm3, %v1230_v25, %v1217_v22 }
 0x8bb   : > { %s397_s7 = scalar_lea.vmem %s2122_s3, %s1482_s9 }
 0x8bd   : > { %v1219_v24 = vpop.permute.xlu1 %1218 }
 0x8be   : > { %v1234_v27 = vsel %vm1232_vm3, %v1231_v26, %v1219_v24 }
 0x977   : > { %v1571_v19 = vpop.f32.mrb[6].mxu0 }
 0x978   : > { %1226 = vrot.lane.b32.xlu1 %v1571_v19, %s1815_s13  ;;  %v1197_v20 = vpop.f32.mrb[7].mxu0 }
 0x979   : > { %1224 = vrot.lane.b32.xlu0 %v1197_v20, %s1815_s13 }
 0x9ea   : > { %v1227_v28 = vpop.permute.xlu1 %1226 }
 0x9eb   : > { %v1237_v29 = vsel %vm1235_vm4, %v1234_v27, %v1227_v28  ;;  %v1225_v9 = vpop.permute.xlu0 %1224 }
 0x9ec   : > { %1239 = vst [vmem:[%s397_s7 + $0x8] sm:$0xff] %v1237_v29  ;;  %v1236_v31 = vsel %vm1235_vm4, %v1233_v30, %v1225_v9 }
 0x9ed   : > { %1238 = vst [vmem:[%s397_s7] sm:$0xff] %v1236_v31 }
 0x9ee PF: > { %s1300_s18 = sand.u32 1, %s1793_s15   ;;  %p1616_p5 = pnand %p1435_p10, %p1900_p9 }
 0x9ef   : > { %s1301_s13 = scalar_lea.sflag [#allocation6], %s1300_s18 }
 0x9f0   : > { %1788 = dma.done.wait (!%p1616_p5), %s1301_s13, 256  }
 0x9f1   : > { %1790 = vsyncadd (!%p1616_p5), %s1301_s13, 4294967040  ;;  %s18_s20 = sadd.s32 1, %s1813_s20   ;;  %s2129_s15 = smov %s1797_s16 }
 0x9f2   : > { %p15_p7 = scmp.ge.s32.totalorder %s18_s20, 4   ;;  %s2130_s16 = smov %s1801_s17 }
 0x9f3   : > { %s2131_s17 = smov %s1898_s28  ;;  %s2132_s18 = smov %s1809_s19 }
 0x9f4   : > { %s2133_s19 = smov %s2135_s23  ;;  %17 = sbr.rel (!%p15_p7) target bundleno = 4 (0x4), region = 214 }
 0x9fb   :  { %1306 = vsyncpa [#allocation6], 1 }
 0x9fc   :  { %1308 = vsyncpa [#allocation6 + $0x1], 1 }

</bundles_post_ra>
